<compile_context>
chip_gen: v7x
topology: tpu7x:2x2x1
jax: 0.10.0
libtpu: 0.0.40
codegen_flags: <defaults>
</compile_context>

<pallas_src>
import jax
import jax.numpy as jnp
from jax import lax
from jax.experimental import pallas as pl
from jax.experimental.pallas import tpu as pltpu


def maxpool_bert_kernel(
    pen_ref, emb_ref, sel_ref, pos_ref,
    w_enc_ref, b_enc_ref, w_pool_ref, b_pool_ref,
    w_cls_ref, b_cls_ref, w_e_ref, b_e_ref,
    w_class_ref, b_class_ref,
    out_ref,
    rel_max_ref,
):
    nb = pl.program_id(1)
    TN, S, H = emb_ref.shape                      # TN sentences per grid step

    @pl.when(nb == 0)
    def _init():
        rel_max_ref[...] = jnp.full(rel_max_ref.shape, -jnp.inf, jnp.float32)

    # ---- synthetic BERT encoder: ONE (TN*S, H) @ (H, H) bf16 MXU matmul, f32 acc ----
    # (S must be a multiple of 8/16 so the leading-dim collapse is layout-clean.)
    x = (emb_ref[...] + pos_ref[...]).reshape(TN * S, H)           # (TN*S, H) bf16
    full = jnp.tanh(
        jnp.dot(x, w_enc_ref[...], preferred_element_type=jnp.float32)
        + b_enc_ref[...]
    )                                                              # (TN*S, H) f32
    full_bf = full.astype(jnp.bfloat16)

    # ---- CLS extraction + entity "mean" pooling as one (3*TN)-row MXU contraction ----
    # sel rows 0..TN-1  : one-hot pickers of token 0 of each sentence (CLS rows)
    # sel rows TN..3TN-1: block-diagonal e1/e2 masks (entity-major, row = k*TN + t)
    pooledsum = jnp.dot(sel_ref[...], full_bf,
                        preferred_element_type=jnp.float32)        # (3*TN, H) f32
    cls_in = pooledsum[0:TN, :].astype(jnp.bfloat16)               # exact full_bf CLS rows
    e_avg = pooledsum[TN:3 * TN, :] * (1.0 / S)                    # (2*TN, H) f32 (mean /S)

    # ---- heads: pooler -> fc_cls on CLS; fc_e on e1/e2 (batched TN/2TN-row matmuls) ----
    pooled = jnp.tanh(
        jnp.dot(cls_in, w_pool_ref[...], preferred_element_type=jnp.float32)
        + b_pool_ref[...]
    )                                                              # (TN, H) f32
    cls_h = jnp.tanh(
        jnp.dot(pooled.astype(jnp.bfloat16), w_cls_ref[...],
                preferred_element_type=jnp.float32)
        + b_cls_ref[...]
    )                                                              # (TN, H) f32
    e_h = jnp.tanh(
        jnp.dot(e_avg.astype(jnp.bfloat16), w_e_ref[...],
                preferred_element_type=jnp.float32)
        + b_e_ref[...]
    )                                                              # (2*TN, H) f32

    # ---- sentence-mask penalty + block max + running max (no concat, row slices) ----
    pen = pen_ref[...]                                             # (TN, 1) = (1-sent)*-1e8
    rel_max_ref[0:1, :] = jnp.maximum(
        rel_max_ref[0:1, :], jnp.max(cls_h + pen, axis=0, keepdims=True))
    rel_max_ref[1:2, :] = jnp.maximum(
        rel_max_ref[1:2, :], jnp.max(e_h[0:TN, :] + pen, axis=0, keepdims=True))
    rel_max_ref[2:3, :] = jnp.maximum(
        rel_max_ref[2:3, :], jnp.max(e_h[TN:2 * TN, :] + pen, axis=0, keepdims=True))

    @pl.when(nb == pl.num_programs(1) - 1)
    def _finalize():
        rel = rel_max_ref[...].astype(jnp.bfloat16)                # (3, H) tanh-bounded
        # classifier weight loaded as three ref slices (never materialize all 3H rows)
        logits = (
            jnp.dot(rel[0:1, :], w_class_ref[0:H, :],
                    preferred_element_type=jnp.float32)
            + jnp.dot(rel[1:2, :], w_class_ref[H:2 * H, :],
                      preferred_element_type=jnp.float32)
            + jnp.dot(rel[2:3, :], w_class_ref[2 * H:3 * H, :],
                      preferred_element_type=jnp.float32)
            + b_class_ref[...]
        )                                                          # (1, C_pad) f32
        # LogSoftmax(dim=-1); pad lanes (bias -1e30) underflow to exp(.) == 0.
        m = jnp.max(logits, axis=-1, keepdims=True)
        z = logits - m
        out_ref[...] = z - jnp.log(jnp.sum(jnp.exp(z), axis=-1, keepdims=True))


def _vreg_padded_bytes(shape, dtype):
    """Approximate VMEM footprint of one buffer, padded to (8|16, 128) tiles."""
    itemsize = jnp.dtype(dtype).itemsize
    dims = [int(d) for d in shape]
    if len(dims) < 2:
        dims = [1] * (2 - len(dims)) + dims
    *lead, r, c = dims
    sub = 8 * max(1, 4 // itemsize)
    rp = pl.cdiv(r, sub) * sub
    cp = pl.cdiv(c, 128) * 128
    n = 1
    for d in lead:
        n *= d
    return n * rp * cp * itemsize


def maxpool_bert_forward(batch_data, params, *, tn=4):
    x = batch_data["data"]                        # (B, N, S) int32 token ids
    e1 = batch_data["e1_mask"].astype(jnp.float32)
    e2 = batch_data["e2_mask"].astype(jnp.float32)
    sent = batch_data["sentence_mask"].astype(jnp.float32)

    B, N, S = x.shape
    H = params["word_emb"].shape[-1]
    C = params["b_class"].shape[-1]
    C_pad = pl.cdiv(C, 128) * 128

    # -- sentence blocking: TN sentences per grid step; pad N up to a multiple of TN.
    TN = max(1, min(tn, N))
    NB = pl.cdiv(N, TN)
    N_pad = NB * TN
    if N_pad != N:
        padn = N_pad - N
        # Padded sentences: token id 0, zero entity masks, sentence_mask 0 (-1e8
        # penalty) -> they never win the per-bag max as long as a bag has >=1
        # valid sentence (the only case where the module itself is well-defined).
        x = jnp.pad(x, ((0, 0), (0, padn), (0, 0)))
        e1 = jnp.pad(e1, ((0, 0), (0, padn), (0, 0)))
        e2 = jnp.pad(e2, ((0, 0), (0, padn), (0, 0)))
        sent = jnp.pad(sent, ((0, 0), (0, padn)))

    # Embedding gather stays in the wrapper (data-dependent row gather), in bf16
    # to halve HBM traffic of the dominant (B, N, S, H) stream.
    tok = params["word_emb"].astype(jnp.bfloat16)[x]               # (B, N_pad, S, H) bf16
    pos = params["pos_emb"].astype(jnp.bfloat16)                   # (S, H) bf16

    # Combined selector per block: rows 0..TN-1 = CLS one-hots (constant),
    # rows TN..3TN-1 = block-diagonal entity masks (entity-major, row = k*TN+t).
    cls_sel = (jnp.arange(TN * S)[None, :]
               == (jnp.arange(TN)[:, None] * S)).astype(jnp.float32)      # (TN, TN*S)
    masks = jnp.stack([e1, e2], axis=1)                                    # (B, 2, N_pad, S)
    masks = masks.reshape(B, 2, NB, TN, S).transpose(0, 2, 1, 3, 4)        # (B, NB, 2, TN, S)
    eye_t = jnp.eye(TN, dtype=jnp.float32)
    e_sel = jnp.einsum("bnkts,tu->bnktus", masks, eye_t)
    e_sel = e_sel.reshape(B, NB, 2 * TN, TN * S)                           # block-diag masks
    sel = jnp.concatenate(
        [jnp.broadcast_to(cls_sel, (B, NB, TN, TN * S)), e_sel], axis=2
    ).astype(jnp.bfloat16)                                                 # (B, NB, 3TN, TN*S)

    # Sentence-mask penalty, precomputed per block as a (TN, 1) f32 column.
    pen = ((1.0 - sent) * -1e8).reshape(B, NB, TN, 1)

    # bf16 weights (MXU-native; halves resident VMEM). Biases stay f32.
    w_enc = params["w_enc"].astype(jnp.bfloat16)
    w_pool = params["w_pool"].astype(jnp.bfloat16)
    w_cls = params["w_cls"].astype(jnp.bfloat16)
    w_e = params["w_e"].astype(jnp.bfloat16)
    # Lane-dense classifier: pad C -> C_pad (zero weight cols, -1e30 bias on pads).
    w_class = jnp.zeros((3 * H, C_pad), jnp.bfloat16).at[:, :C].set(
        params["w_class"].astype(jnp.bfloat16))
    b_class = jnp.full((1, C_pad), -1e30, jnp.float32).at[:, :C].set(params["b_class"])

    grid_spec = pltpu.PrefetchScalarGridSpec(
        num_scalar_prefetch=0,
        grid=(B, NB),
        in_specs=[
            pl.BlockSpec((None, None, TN, 1), lambda b, nb: (b, nb, 0, 0)),       # penalty
            pl.BlockSpec((None, TN, S, H), lambda b, nb: (b, nb, 0, 0)),          # emb tile
            pl.BlockSpec((None, None, 3 * TN, TN * S), lambda b, nb: (b, nb, 0, 0)),  # selector
            pl.BlockSpec((S, H), lambda b, nb: (0, 0)),                           # pos emb
            pl.BlockSpec((H, H), lambda b, nb: (0, 0)),                           # w_enc
            pl.BlockSpec((1, H), lambda b, nb: (0, 0)),                           # b_enc
            pl.BlockSpec((H, H), lambda b, nb: (0, 0)),                           # w_pool
            pl.BlockSpec((1, H), lambda b, nb: (0, 0)),                           # b_pool
            pl.BlockSpec((H, H), lambda b, nb: (0, 0)),                           # w_cls
            pl.BlockSpec((1, H), lambda b, nb: (0, 0)),                           # b_cls
            pl.BlockSpec((H, H), lambda b, nb: (0, 0)),                           # w_e
            pl.BlockSpec((1, H), lambda b, nb: (0, 0)),                           # b_e
            pl.BlockSpec((3 * H, C_pad), lambda b, nb: (0, 0)),                   # w_class
            pl.BlockSpec((1, C_pad), lambda b, nb: (0, 0)),                       # b_class
        ],
        out_specs=pl.BlockSpec((None, 1, C_pad), lambda b, nb: (b, 0, 0)),
        scratch_shapes=[pltpu.VMEM((3, H), jnp.float32)],       # [cls, e1, e2] running max
    )

    # VMEM: every pipelined buffer (including constant-index weights) is
    # double-buffered by Pallas -> count 2x, plus scratch and headroom, clamped
    # to the v7x 64 MiB per-TC ceiling (shrink TN if this ever saturates).
    block_bytes = (
        _vreg_padded_bytes((TN, 1), jnp.float32)
        + _vreg_padded_bytes((TN, S, H), jnp.bfloat16)
        + _vreg_padded_bytes((3 * TN, TN * S), jnp.bfloat16)
        + _vreg_padded_bytes((S, H), jnp.bfloat16)
        + 4 * _vreg_padded_bytes((H, H), jnp.bfloat16)
        + 4 * _vreg_padded_bytes((1, H), jnp.float32)
        + _vreg_padded_bytes((3 * H, C_pad), jnp.bfloat16)
        + _vreg_padded_bytes((1, C_pad), jnp.float32)
        + _vreg_padded_bytes((1, C_pad), jnp.float32)           # output block
    )
    vmem_limit = int(min(
        max(2 * block_bytes + _vreg_padded_bytes((3, H), jnp.float32) + (4 << 20),
            32 << 20),
        64 << 20))

    resident_bytes = int(
        pos.size * 2 + (w_enc.size + w_pool.size + w_cls.size + w_e.size) * 2
        + (params["b_enc"].size + params["b_pool"].size
           + params["b_cls"].size + params["b_e"].size) * 4
        + w_class.size * 2 + b_class.size * 4)
    flops = int(
        2 * B * N_pad * S * H * H                        # encoder
        + 2 * B * NB * (3 * TN) * (TN * S) * H           # CLS/entity selector contraction
        + 2 * B * N_pad * 4 * H * H                      # pooler + fc_cls + 2 x fc_e
        + 2 * B * 3 * H * C_pad)                         # classifier
    transcendentals = int(B * N_pad * (S * H + 4 * H) + B * C_pad)
    bytes_accessed = int(tok.size * 2 + sel.size * 2 + pen.size * 4
                         + resident_bytes + B * C_pad * 4)

    out = pl.pallas_call(
        maxpool_bert_kernel,
        out_shape=jax.ShapeDtypeStruct((B, 1, C_pad), jnp.float32),
        grid_spec=grid_spec,
        compiler_params=pltpu.CompilerParams(
            dimension_semantics=("parallel", "arbitrary"),   # B across TCs; NB = max reduction
            vmem_limit_bytes=vmem_limit,
        ),
        cost_estimate=pl.CostEstimate(
            flops=flops, transcendentals=transcendentals, bytes_accessed=bytes_accessed),
    )(
        pen, tok, sel, pos,
        w_enc, params["b_enc"], w_pool, params["b_pool"],
        w_cls, params["b_cls"], w_e, params["b_e"],
        w_class, b_class,
    )
    return out[:, 0, :C]


def maxpool_bert_reference(batch_data, params):
    """Pure-JAX reference with the same bf16 casting points as the kernel."""
    bf = jnp.bfloat16
    x = batch_data["data"]
    e1 = batch_data["e1_mask"].astype(bf)
    e2 = batch_data["e2_mask"].astype(bf)
    sent = batch_data["sentence_mask"].astype(jnp.float32)
    S = x.shape[-1]

    tok = params["word_emb"].astype(bf)[x]
    pos = params["pos_emb"].astype(bf)
    xin = tok + pos
    full = jnp.tanh(
        jnp.einsum("bnsh,hk->bnsk", xin, params["w_enc"].astype(bf),
                   preferred_element_type=jnp.float32) + params["b_enc"])
    full_bf = full.astype(bf)
    pooled = jnp.tanh(
        jnp.einsum("bnh,hk->bnk", full_bf[:, :, 0, :], params["w_pool"].astype(bf),
                   preferred_element_type=jnp.float32) + params["b_pool"])
    e1_avg = jnp.einsum("bnsh,bns->bnh", full_bf, e1,
                        preferred_element_type=jnp.float32) / S
    e2_avg = jnp.einsum("bnsh,bns->bnh", full_bf, e2,
                        preferred_element_type=jnp.float32) / S
    cls_h = jnp.tanh(
        jnp.einsum("bnh,hk->bnk", pooled.astype(bf), params["w_cls"].astype(bf),
                   preferred_element_type=jnp.float32) + params["b_cls"])
    e1_h = jnp.tanh(
        jnp.einsum("bnh,hk->bnk", e1_avg.astype(bf), params["w_e"].astype(bf),
                   preferred_element_type=jnp.float32) + params["b_e"])
    e2_h = jnp.tanh(
        jnp.einsum("bnh,hk->bnk", e2_avg.astype(bf), params["w_e"].astype(bf),
                   preferred_element_type=jnp.float32) + params["b_e"])
    rel = jnp.concatenate([cls_h, e1_h, e2_h], axis=-1)
    rel = rel + (1.0 - sent)[..., None] * -1e8
    rel = jnp.max(rel, axis=1)
    logits = jnp.einsum("bk,kc->bc", rel.astype(bf), params["w_class"].astype(bf),
                        preferred_element_type=jnp.float32) + params["b_class"]
    return jax.nn.log_softmax(logits, axis=-1)


def init_params(key, vocab, S, H, C):
    ks = jax.random.split(key, 12)
    n = lambda k, shape: jax.random.normal(k, shape, jnp.float32) * 0.02
    return {
        # synthetic-BERT parameters
        "word_emb": n(ks[0], (vocab, H)),
        "pos_emb": n(ks[1], (S, H)),
        "w_enc": n(ks[2], (H, H)),
        "b_enc": n(ks[3], (1, H)),
        "w_pool": n(ks[4], (H, H)),
        "b_pool": n(ks[5], (1, H)),
        # head parameters (module __init__ shapes: fc_e, fc_cls: HxH; fc_class: 3H x C)
        "w_cls": n(ks[6], (H, H)),
        "b_cls": n(ks[7], (1, H)),
        "w_e": n(ks[8], (H, H)),
        "b_e": n(ks[9], (1, H)),
        "w_class": n(ks[10], (3 * H, C)),
        "b_class": n(ks[11], (1, C)),
    }


if __name__ == "__main__":
    B, N, S, H, C, V = 2, 5, 16, 64, 5, 64
    key = jax.random.PRNGKey(0)
    k_tok, k_e1, k_e2, k_sent, k_par = jax.random.split(key, 5)

    data = jax.random.randint(k_tok, (B, N, S), 0, V, dtype=jnp.int32)
    pad_mask = jnp.ones((B, N, S), jnp.float32)
    e1_mask = (jax.random.uniform(k_e1, (B, N, S)) < 0.25).astype(jnp.float32)
    e2_mask = (jax.random.uniform(k_e2, (B, N, S)) < 0.25).astype(jnp.float32)
    sentence_mask = (jax.random.uniform(k_sent, (B, N)) < 0.7).astype(jnp.float32)
    sentence_mask = sentence_mask.at[:, 0].set(1.0)   # ensure >=1 valid sentence per bag

    batch_data = {
        "data": data,
        "pad_mask": pad_mask,
        "e1_mask": e1_mask,
        "e2_mask": e2_mask,
        "sentence_mask": sentence_mask,
    }
    params = init_params(k_par, V, S, H, C)

    out = jax.block_until_ready(maxpool_bert_forward(batch_data, params, tn=4))
    ref = jax.block_until_ready(maxpool_bert_reference(batch_data, params))

    assert out.shape == (B, C), out.shape
    assert bool(jnp.all(jnp.isfinite(out)))
    # log-softmax rows must exponentiate-sum to ~1
    assert bool(jnp.allclose(jnp.sum(jnp.exp(out), axis=-1), 1.0, atol=1e-4))
    # kernel must match the pure-JAX reference
    assert bool(jnp.allclose(out, ref, atol=2e-3, rtol=2e-3)), jnp.max(jnp.abs(out - ref))
    print("KERNEL_OK")
</pallas_src>

<mosaic_0001>
module attributes {stable_mosaic.version = 11 : i64} {
  func.func @maxpool_bert_kernel(%arg0: i32, %arg1: i32, %arg2: memref<1x1x4x1xf32, #tpu.memory_space<vmem>>, %arg3: memref<1x4x16x64xbf16, #tpu.memory_space<vmem>>, %arg4: memref<1x1x12x64xbf16, #tpu.memory_space<vmem>>, %arg5: memref<16x64xbf16, #tpu.memory_space<vmem>>, %arg6: memref<64x64xbf16, #tpu.memory_space<vmem>>, %arg7: memref<1x64xf32, #tpu.memory_space<vmem>>, %arg8: memref<64x64xbf16, #tpu.memory_space<vmem>>, %arg9: memref<1x64xf32, #tpu.memory_space<vmem>>, %arg10: memref<64x64xbf16, #tpu.memory_space<vmem>>, %arg11: memref<1x64xf32, #tpu.memory_space<vmem>>, %arg12: memref<64x64xbf16, #tpu.memory_space<vmem>>, %arg13: memref<1x64xf32, #tpu.memory_space<vmem>>, %arg14: memref<192x128xbf16, #tpu.memory_space<vmem>>, %arg15: memref<1x128xf32, #tpu.memory_space<vmem>>, %arg16: memref<1x1x128xf32, #tpu.memory_space<vmem>>, %arg17: memref<3x64xf32, #tpu.memory_space<vmem>>) attributes {dimension_semantics = [#tpu.dimension_semantics<parallel>, #tpu.dimension_semantics<arbitrary>], iteration_bounds = array<i64: 2, 2>, scalar_prefetch = 0 : i64, scratch_operands = 1 : i64, tpu.core_type = #tpu.core_type<tc>, window_params = [{transform_indices = @transform_0, window_bounds = array<i64: 1, 1, 4, 1>}, {transform_indices = @transform_1, window_bounds = array<i64: 1, 4, 16, 64>}, {transform_indices = @transform_2, window_bounds = array<i64: 1, 1, 12, 64>}, {pipeline_mode = #tpu.pipeline_mode<synchronous>, transform_indices = @transform_3, window_bounds = array<i64: 16, 64>}, {pipeline_mode = #tpu.pipeline_mode<synchronous>, transform_indices = @transform_4, window_bounds = array<i64: 64, 64>}, {pipeline_mode = #tpu.pipeline_mode<synchronous>, transform_indices = @transform_5, window_bounds = array<i64: 1, 64>}, {pipeline_mode = #tpu.pipeline_mode<synchronous>, transform_indices = @transform_6, window_bounds = array<i64: 64, 64>}, {pipeline_mode = #tpu.pipeline_mode<synchronous>, transform_indices = @transform_7, window_bounds = array<i64: 1, 64>}, {pipeline_mode = #tpu.pipeline_mode<synchronous>, transform_indices = @transform_8, window_bounds = array<i64: 64, 64>}, {pipeline_mode = #tpu.pipeline_mode<synchronous>, transform_indices = @transform_9, window_bounds = array<i64: 1, 64>}, {pipeline_mode = #tpu.pipeline_mode<synchronous>, transform_indices = @transform_10, window_bounds = array<i64: 64, 64>}, {pipeline_mode = #tpu.pipeline_mode<synchronous>, transform_indices = @transform_11, window_bounds = array<i64: 1, 64>}, {pipeline_mode = #tpu.pipeline_mode<synchronous>, transform_indices = @transform_12, window_bounds = array<i64: 192, 128>}, {pipeline_mode = #tpu.pipeline_mode<synchronous>, transform_indices = @transform_13, window_bounds = array<i64: 1, 128>}, {transform_indices = @transform_14, window_bounds = array<i64: 1, 1, 128>}]} {
    %c0_i32 = arith.constant 0 : i32
    %0 = arith.cmpi eq, %arg1, %c0_i32 : i32
    %1 = arith.extui %0 : i1 to i32
    %c0_i32_0 = arith.constant 0 : i32
    %2 = arith.cmpi ne, %1, %c0_i32_0 : i32
    scf.if %2 {
      %cst_49 = arith.constant 0xFF800000 : f32
      %73 = vector.broadcast %cst_49 : f32 to vector<3x64xf32>
      %c0_50 = arith.constant 0 : index
      %c0_51 = arith.constant 0 : index
      %74 = vector.load %arg17[%c0_50, %c0_51] : memref<3x64xf32, #tpu.memory_space<vmem>>, vector<3x64xf32>
      tpu.vector_store %arg17[%c0_50, %c0_51], %73 {strides = array<i32>} : memref<3x64xf32, #tpu.memory_space<vmem>>, vector<3x64xf32>,
    } else {
    }
    %c0 = arith.constant 0 : index
    %c0_1 = arith.constant 0 : index
    %c0_2 = arith.constant 0 : index
    %c0_3 = arith.constant 0 : index
    %3 = vector.load %arg3[%c0, %c0_1, %c0_2, %c0_3] : memref<1x4x16x64xbf16, #tpu.memory_space<vmem>>, vector<1x4x16x64xbf16>
    %4 = vector.shape_cast %3 : vector<1x4x16x64xbf16> to vector<4x16x64xbf16>
    %c0_4 = arith.constant 0 : index
    %c0_5 = arith.constant 0 : index
    %5 = vector.load %arg5[%c0_4, %c0_5] : memref<16x64xbf16, #tpu.memory_space<vmem>>, vector<16x64xbf16>
    %6 = vector.shape_cast %5 : vector<16x64xbf16> to vector<1x16x64xbf16>
    %7 = vector.broadcast %6 : vector<1x16x64xbf16> to vector<4x16x64xbf16>
    %8 = arith.addf %4, %7 : vector<4x16x64xbf16>
    %9 = vector.shape_cast %8 : vector<4x16x64xbf16> to vector<64x64xbf16>
    %c0_6 = arith.constant 0 : index
    %c0_7 = arith.constant 0 : index
    %10 = vector.load %arg6[%c0_6, %c0_7] : memref<64x64xbf16, #tpu.memory_space<vmem>>, vector<64x64xbf16>
    %cst = arith.constant dense<0.000000e+00> : vector<64x64xf32>
    %11 = tpu.matmul %9, %10, %cst {dimension_numbers = #tpu.dot_dimension_numbers<[1], [0], [0], [1], [0, 0, 1, 1], [], []>} : vector<64x64xbf16>, vector<64x64xbf16>, vector<64x64xf32> -> vector<64x64xf32>
    %c0_8 = arith.constant 0 : index
    %c0_9 = arith.constant 0 : index
    %12 = vector.load %arg7[%c0_8, %c0_9] : memref<1x64xf32, #tpu.memory_space<vmem>>, vector<1x64xf32>
    %13 = vector.broadcast %12 : vector<1x64xf32> to vector<64x64xf32>
    %14 = arith.addf %11, %13 : vector<64x64xf32>
    %15 = math.tanh %14 : vector<64x64xf32>
    %16 = arith.truncf %15 : vector<64x64xf32> to vector<64x64xbf16>
    %c0_10 = arith.constant 0 : index
    %c0_11 = arith.constant 0 : index
    %c0_12 = arith.constant 0 : index
    %c0_13 = arith.constant 0 : index
    %17 = vector.load %arg4[%c0_10, %c0_11, %c0_12, %c0_13] : memref<1x1x12x64xbf16, #tpu.memory_space<vmem>>, vector<1x1x12x64xbf16>
    %18 = vector.shape_cast %17 : vector<1x1x12x64xbf16> to vector<12x64xbf16>
    %cst_14 = arith.constant dense<0.000000e+00> : vector<12x64xf32>
    %19 = tpu.matmul %18, %16, %cst_14 {dimension_numbers = #tpu.dot_dimension_numbers<[1], [0], [0], [1], [0, 0, 1, 1], [], []>} : vector<12x64xbf16>, vector<64x64xbf16>, vector<12x64xf32> -> vector<12x64xf32>
    %20 = vector.extract_strided_slice %19 {offsets = [0, 0], sizes = [4, 64], strides = [1, 1]} : vector<12x64xf32> to vector<4x64xf32>
    %21 = arith.truncf %20 : vector<4x64xf32> to vector<4x64xbf16>
    %22 = vector.extract_strided_slice %19 {offsets = [4, 0], sizes = [8, 64], strides = [1, 1]} : vector<12x64xf32> to vector<8x64xf32>
    %cst_15 = arith.constant 6.250000e-02 : f32
    %23 = vector.broadcast %cst_15 : f32 to vector<8x64xf32>
    %24 = arith.mulf %22, %23 : vector<8x64xf32>
    %c0_16 = arith.constant 0 : index
    %c0_17 = arith.constant 0 : index
    %25 = vector.load %arg8[%c0_16, %c0_17] : memref<64x64xbf16, #tpu.memory_space<vmem>>, vector<64x64xbf16>
    %cst_18 = arith.constant dense<0.000000e+00> : vector<4x64xf32>
    %26 = tpu.matmul %21, %25, %cst_18 {dimension_numbers = #tpu.dot_dimension_numbers<[1], [0], [0], [1], [0, 0, 1, 1], [], []>} : vector<4x64xbf16>, vector<64x64xbf16>, vector<4x64xf32> -> vector<4x64xf32>
    %c0_19 = arith.constant 0 : index
    %c0_20 = arith.constant 0 : index
    %27 = vector.load %arg9[%c0_19, %c0_20] : memref<1x64xf32, #tpu.memory_space<vmem>>, vector<1x64xf32>
    %28 = vector.broadcast %27 : vector<1x64xf32> to vector<4x64xf32>
    %29 = arith.addf %26, %28 : vector<4x64xf32>
    %30 = math.tanh %29 : vector<4x64xf32>
    %31 = arith.truncf %30 : vector<4x64xf32> to vector<4x64xbf16>
    %c0_21 = arith.constant 0 : index
    %c0_22 = arith.constant 0 : index
    %32 = vector.load %arg10[%c0_21, %c0_22] : memref<64x64xbf16, #tpu.memory_space<vmem>>, vector<64x64xbf16>
    %cst_23 = arith.constant dense<0.000000e+00> : vector<4x64xf32>
    %33 = tpu.matmul %31, %32, %cst_23 {dimension_numbers = #tpu.dot_dimension_numbers<[1], [0], [0], [1], [0, 0, 1, 1], [], []>} : vector<4x64xbf16>, vector<64x64xbf16>, vector<4x64xf32> -> vector<4x64xf32>
    %c0_24 = arith.constant 0 : index
    %c0_25 = arith.constant 0 : index
    %34 = vector.load %arg11[%c0_24, %c0_25] : memref<1x64xf32, #tpu.memory_space<vmem>>, vector<1x64xf32>
    %35 = vector.broadcast %34 : vector<1x64xf32> to vector<4x64xf32>
    %36 = arith.addf %33, %35 : vector<4x64xf32>
    %37 = math.tanh %36 : vector<4x64xf32>
    %38 = arith.truncf %24 : vector<8x64xf32> to vector<8x64xbf16>
    %c0_26 = arith.constant 0 : index
    %c0_27 = arith.constant 0 : index
    %39 = vector.load %arg12[%c0_26, %c0_27] : memref<64x64xbf16, #tpu.memory_space<vmem>>, vector<64x64xbf16>
    %cst_28 = arith.constant dense<0.000000e+00> : vector<8x64xf32>
    %40 = tpu.matmul %38, %39, %cst_28 {dimension_numbers = #tpu.dot_dimension_numbers<[1], [0], [0], [1], [0, 0, 1, 1], [], []>} : vector<8x64xbf16>, vector<64x64xbf16>, vector<8x64xf32> -> vector<8x64xf32>
    %c0_29 = arith.constant 0 : index
    %c0_30 = arith.constant 0 : index
    %41 = vector.load %arg13[%c0_29, %c0_30] : memref<1x64xf32, #tpu.memory_space<vmem>>, vector<1x64xf32>
    %42 = vector.broadcast %41 : vector<1x64xf32> to vector<8x64xf32>
    %43 = arith.addf %40, %42 : vector<8x64xf32>
    %44 = math.tanh %43 : vector<8x64xf32>
    %c0_31 = arith.constant 0 : index
    %c0_32 = arith.constant 0 : index
    %c0_33 = arith.constant 0 : index
    %c0_34 = arith.constant 0 : index
    %45 = vector.load %arg2[%c0_31, %c0_32, %c0_33, %c0_34] : memref<1x1x4x1xf32, #tpu.memory_space<vmem>>, vector<1x1x4x1xf32>
    %46 = vector.shape_cast %45 : vector<1x1x4x1xf32> to vector<4x1xf32>
    %c0_35 = arith.constant 0 : index
    %c0_36 = arith.constant 0 : index
    %47 = vector.load %arg17[%c0_35, %c0_36] : memref<3x64xf32, #tpu.memory_space<vmem>>, vector<1x64xf32>
    %48 = vector.broadcast %46 : vector<4x1xf32> to vector<4x64xf32>
    %49 = arith.addf %37, %48 : vector<4x64xf32>
    %cst_37 = arith.constant dense<0xFF800000> : vector<64xf32>
    %50 = vector.multi_reduction <maximumf>, %49, %cst_37 [0] : vector<4x64xf32> to vector<64xf32>
    %51 = vector.shape_cast %50 : vector<64xf32> to vector<1x64xf32>
    %52 = arith.maximumf %47, %51 : vector<1x64xf32>
    %c0_38 = arith.constant 0 : index
    %c0_39 = arith.constant 0 : index
    %53 = vector.load %arg17[%c0_38, %c0_39] : memref<3x64xf32, #tpu.memory_space<vmem>>, vector<1x64xf32>
    tpu.vector_store %arg17[%c0_38, %c0_39], %52 {strides = array<i32>} : memref<3x64xf32, #tpu.memory_space<vmem>>, vector<1x64xf32>,
    %c1 = arith.constant 1 : index
    %c0_40 = arith.constant 0 : index
    %54 = vector.load %arg17[%c1, %c0_40] : memref<3x64xf32, #tpu.memory_space<vmem>>, vector<1x64xf32>
    %55 = vector.extract_strided_slice %44 {offsets = [0, 0], sizes = [4, 64], strides = [1, 1]} : vector<8x64xf32> to vector<4x64xf32>
    %56 = vector.broadcast %46 : vector<4x1xf32> to vector<4x64xf32>
    %57 = arith.addf %55, %56 : vector<4x64xf32>
    %cst_41 = arith.constant dense<0xFF800000> : vector<64xf32>
    %58 = vector.multi_reduction <maximumf>, %57, %cst_41 [0] : vector<4x64xf32> to vector<64xf32>
    %59 = vector.shape_cast %58 : vector<64xf32> to vector<1x64xf32>
    %60 = arith.maximumf %54, %59 : vector<1x64xf32>
    %c1_42 = arith.constant 1 : index
    %c0_43 = arith.constant 0 : index
    %61 = vector.load %arg17[%c1_42, %c0_43] : memref<3x64xf32, #tpu.memory_space<vmem>>, vector<1x64xf32>
    tpu.vector_store %arg17[%c1_42, %c0_43], %60 {strides = array<i32>} : memref<3x64xf32, #tpu.memory_space<vmem>>, vector<1x64xf32>,
    %c2 = arith.constant 2 : index
    %c0_44 = arith.constant 0 : index
    %62 = vector.load %arg17[%c2, %c0_44] : memref<3x64xf32, #tpu.memory_space<vmem>>, vector<1x64xf32>
    %63 = vector.extract_strided_slice %44 {offsets = [4, 0], sizes = [4, 64], strides = [1, 1]} : vector<8x64xf32> to vector<4x64xf32>
    %64 = vector.broadcast %46 : vector<4x1xf32> to vector<4x64xf32>
    %65 = arith.addf %63, %64 : vector<4x64xf32>
    %cst_45 = arith.constant dense<0xFF800000> : vector<64xf32>
    %66 = vector.multi_reduction <maximumf>, %65, %cst_45 [0] : vector<4x64xf32> to vector<64xf32>
    %67 = vector.shape_cast %66 : vector<64xf32> to vector<1x64xf32>
    %68 = arith.maximumf %62, %67 : vector<1x64xf32>
    %c2_46 = arith.constant 2 : index
    %c0_47 = arith.constant 0 : index
    %69 = vector.load %arg17[%c2_46, %c0_47] : memref<3x64xf32, #tpu.memory_space<vmem>>, vector<1x64xf32>
    tpu.vector_store %arg17[%c2_46, %c0_47], %68 {strides = array<i32>} : memref<3x64xf32, #tpu.memory_space<vmem>>, vector<1x64xf32>,
    %c1_i32 = arith.constant 1 : i32
    %70 = arith.cmpi eq, %arg1, %c1_i32 : i32
    %71 = arith.extui %70 : i1 to i32
    %c0_i32_48 = arith.constant 0 : i32
    %72 = arith.cmpi ne, %71, %c0_i32_48 : i32
    scf.if %72 {
      %c0_49 = arith.constant 0 : index
      %c0_50 = arith.constant 0 : index
      %73 = vector.load %arg17[%c0_49, %c0_50] : memref<3x64xf32, #tpu.memory_space<vmem>>, vector<3x64xf32>
      %74 = arith.truncf %73 : vector<3x64xf32> to vector<3x64xbf16>
      %75 = vector.extract_strided_slice %74 {offsets = [0, 0], sizes = [1, 64], strides = [1, 1]} : vector<3x64xbf16> to vector<1x64xbf16>
      %c0_51 = arith.constant 0 : index
      %c0_52 = arith.constant 0 : index
      %76 = vector.load %arg14[%c0_51, %c0_52] : memref<192x128xbf16, #tpu.memory_space<vmem>>, vector<64x128xbf16>
      %cst_53 = arith.constant dense<0.000000e+00> : vector<1x128xf32>
      %77 = tpu.matmul %75, %76, %cst_53 {dimension_numbers = #tpu.dot_dimension_numbers<[1], [0], [0], [1], [0, 0, 1, 1], [], []>} : vector<1x64xbf16>, vector<64x128xbf16>, vector<1x128xf32> -> vector<1x128xf32>
      %78 = vector.extract_strided_slice %74 {offsets = [1, 0], sizes = [1, 64], strides = [1, 1]} : vector<3x64xbf16> to vector<1x64xbf16>
      %c64 = arith.constant 64 : index
      %c0_54 = arith.constant 0 : index
      %79 = vector.load %arg14[%c64, %c0_54] : memref<192x128xbf16, #tpu.memory_space<vmem>>, vector<64x128xbf16>
      %cst_55 = arith.constant dense<0.000000e+00> : vector<1x128xf32>
      %80 = tpu.matmul %78, %79, %cst_55 {dimension_numbers = #tpu.dot_dimension_numbers<[1], [0], [0], [1], [0, 0, 1, 1], [], []>} : vector<1x64xbf16>, vector<64x128xbf16>, vector<1x128xf32> -> vector<1x128xf32>
      %81 = arith.addf %77, %80 : vector<1x128xf32>
      %82 = vector.extract_strided_slice %74 {offsets = [2, 0], sizes = [1, 64], strides = [1, 1]} : vector<3x64xbf16> to vector<1x64xbf16>
      %c128 = arith.constant 128 : index
      %c0_56 = arith.constant 0 : index
      %83 = vector.load %arg14[%c128, %c0_56] : memref<192x128xbf16, #tpu.memory_space<vmem>>, vector<64x128xbf16>
      %cst_57 = arith.constant dense<0.000000e+00> : vector<1x128xf32>
      %84 = tpu.matmul %82, %83, %cst_57 {dimension_numbers = #tpu.dot_dimension_numbers<[1], [0], [0], [1], [0, 0, 1, 1], [], []>} : vector<1x64xbf16>, vector<64x128xbf16>, vector<1x128xf32> -> vector<1x128xf32>
      %85 = arith.addf %81, %84 : vector<1x128xf32>
      %c0_58 = arith.constant 0 : index
      %c0_59 = arith.constant 0 : index
      %86 = vector.load %arg15[%c0_58, %c0_59] : memref<1x128xf32, #tpu.memory_space<vmem>>, vector<1x128xf32>
      %87 = arith.addf %85, %86 : vector<1x128xf32>
      %cst_60 = arith.constant dense<0xFF800000> : vector<1xf32>
      %88 = vector.multi_reduction <maximumf>, %87, %cst_60 [1] : vector<1x128xf32> to vector<1xf32>
      %89 = vector.shape_cast %88 : vector<1xf32> to vector<1x1xf32>
      %90 = vector.broadcast %89 : vector<1x1xf32> to vector<1x128xf32>
      %91 = arith.subf %87, %90 : vector<1x128xf32>
      %92 = math.exp %91 : vector<1x128xf32>
      %cst_61 = arith.constant dense<0.000000e+00> : vector<1xf32>
      %93 = vector.multi_reduction <add>, %92, %cst_61 [1] : vector<1x128xf32> to vector<1xf32>
      %94 = vector.shape_cast %93 : vector<1xf32> to vector<1x1xf32>
      %95 = math.log %94 : vector<1x1xf32>
      %96 = vector.broadcast %95 : vector<1x1xf32> to vector<1x128xf32>
      %97 = arith.subf %91, %96 : vector<1x128xf32>
      %c0_62 = arith.constant 0 : index
      %c0_63 = arith.constant 0 : index
      %c0_64 = arith.constant 0 : index
      %98 = vector.load %arg16[%c0_62, %c0_63, %c0_64] : memref<1x1x128xf32, #tpu.memory_space<vmem>>, vector<1x1x128xf32>
      %99 = vector.shape_cast %98 : vector<1x1x128xf32> to vector<1x128xf32>
      %100 = vector.shape_cast %97 : vector<1x128xf32> to vector<1x1x128xf32>
      tpu.vector_store %arg16[%c0_62, %c0_63, %c0_64], %100 {strides = array<i32>} : memref<1x1x128xf32, #tpu.memory_space<vmem>>, vector<1x1x128xf32>,
    } else {
    }
    return
  }
  func.func @transform_0(%arg0: i32, %arg1: i32) -> (i32, i32, i32, i32) {
    %c0_i32 = arith.constant 0 : i32
    %c0_i32_0 = arith.constant 0 : i32
    %c0_i32_1 = arith.constant 0 : i32
    return %arg0, %arg1, %c0_i32, %c0_i32_0 : i32, i32, i32, i32
  }
  func.func @transform_1(%arg0: i32, %arg1: i32) -> (i32, i32, i32, i32) {
    %c0_i32 = arith.constant 0 : i32
    %c0_i32_0 = arith.constant 0 : i32
    %c0_i32_1 = arith.constant 0 : i32
    return %arg0, %arg1, %c0_i32, %c0_i32_0 : i32, i32, i32, i32
  }
  func.func @transform_2(%arg0: i32, %arg1: i32) -> (i32, i32, i32, i32) {
    %c0_i32 = arith.constant 0 : i32
    %c0_i32_0 = arith.constant 0 : i32
    %c0_i32_1 = arith.constant 0 : i32
    return %arg0, %arg1, %c0_i32, %c0_i32_0 : i32, i32, i32, i32
  }
  func.func @transform_3(%arg0: i32, %arg1: i32) -> (i32, i32) {
    %c0_i32 = arith.constant 0 : i32
    %c0_i32_0 = arith.constant 0 : i32
    %c0_i32_1 = arith.constant 0 : i32
    return %c0_i32, %c0_i32_0 : i32, i32
  }
  func.func @transform_4(%arg0: i32, %arg1: i32) -> (i32, i32) {
    %c0_i32 = arith.constant 0 : i32
    %c0_i32_0 = arith.constant 0 : i32
    %c0_i32_1 = arith.constant 0 : i32
    return %c0_i32, %c0_i32_0 : i32, i32
  }
  func.func @transform_5(%arg0: i32, %arg1: i32) -> (i32, i32) {
    %c0_i32 = arith.constant 0 : i32
    %c0_i32_0 = arith.constant 0 : i32
    %c0_i32_1 = arith.constant 0 : i32
    return %c0_i32, %c0_i32_0 : i32, i32
  }
  func.func @transform_6(%arg0: i32, %arg1: i32) -> (i32, i32) {
    %c0_i32 = arith.constant 0 : i32
    %c0_i32_0 = arith.constant 0 : i32
    %c0_i32_1 = arith.constant 0 : i32
    return %c0_i32, %c0_i32_0 : i32, i32
  }
  func.func @transform_7(%arg0: i32, %arg1: i32) -> (i32, i32) {
    %c0_i32 = arith.constant 0 : i32
    %c0_i32_0 = arith.constant 0 : i32
    %c0_i32_1 = arith.constant 0 : i32
    return %c0_i32, %c0_i32_0 : i32, i32
  }
  func.func @transform_8(%arg0: i32, %arg1: i32) -> (i32, i32) {
    %c0_i32 = arith.constant 0 : i32
    %c0_i32_0 = arith.constant 0 : i32
    %c0_i32_1 = arith.constant 0 : i32
    return %c0_i32, %c0_i32_0 : i32, i32
  }
  func.func @transform_9(%arg0: i32, %arg1: i32) -> (i32, i32) {
    %c0_i32 = arith.constant 0 : i32
    %c0_i32_0 = arith.constant 0 : i32
    %c0_i32_1 = arith.constant 0 : i32
    return %c0_i32, %c0_i32_0 : i32, i32
  }
  func.func @transform_10(%arg0: i32, %arg1: i32) -> (i32, i32) {
    %c0_i32 = arith.constant 0 : i32
    %c0_i32_0 = arith.constant 0 : i32
    %c0_i32_1 = arith.constant 0 : i32
    return %c0_i32, %c0_i32_0 : i32, i32
  }
  func.func @transform_11(%arg0: i32, %arg1: i32) -> (i32, i32) {
    %c0_i32 = arith.constant 0 : i32
    %c0_i32_0 = arith.constant 0 : i32
    %c0_i32_1 = arith.constant 0 : i32
    return %c0_i32, %c0_i32_0 : i32, i32
  }
  func.func @transform_12(%arg0: i32, %arg1: i32) -> (i32, i32) {
    %c0_i32 = arith.constant 0 : i32
    %c0_i32_0 = arith.constant 0 : i32
    %c0_i32_1 = arith.constant 0 : i32
    return %c0_i32, %c0_i32_0 : i32, i32
  }
  func.func @transform_13(%arg0: i32, %arg1: i32) -> (i32, i32) {
    %c0_i32 = arith.constant 0 : i32
    %c0_i32_0 = arith.constant 0 : i32
    %c0_i32_1 = arith.constant 0 : i32
    return %c0_i32, %c0_i32_0 : i32, i32
  }
  func.func @transform_14(%arg0: i32, %arg1: i32) -> (i32, i32, i32) {
    %c0_i32 = arith.constant 0 : i32
    %c0_i32_0 = arith.constant 0 : i32
    %c0_i32_1 = arith.constant 0 : i32
    return %arg0, %c0_i32, %c0_i32_0 : i32, i32, i32
  }
}

</mosaic_0001>

<bundles_post_ra>
// kernel: tpu_custom_call.1
= control target key start
LH: loop header
LB: loop body
LE: loop exit
PB: predicated region body
PF: predicated region fallthrough
CT: control target
= control target key end

     0   :  { %s2841_s0 = inlined_call_operand.vmem [shape: f32[2,2,4,1], index: 0, kind: input, shape index: {}]   ;;  %s2842_s1 = inlined_call_operand.hbm [shape: bf16[2,8,16,64], index: 1, kind: input, shape index: {}]   ;;  %s2843_s2 = inlined_call_operand.vmem [shape: bf16[2,2,12,64], index: 2, kind: input, shape index: {}]   ;;  %s2844_s3 = inlined_call_operand.vmem [shape: bf16[16,64], index: 3, kind: input, shape index: {}]   ;;  %s2845_s4 = inlined_call_operand.hbm [shape: bf16[64,64], index: 4, kind: input, shape index: {}]   ;;  %s2846_s5 = inlined_call_operand.vmem [shape: f32[1,64], index: 5, kind: input, shape index: {}]   ;;  %s2847_s6 = inlined_call_operand.hbm [shape: bf16[64,64], index: 6, kind: input, shape index: {}]   ;;  %s2848_s7 = inlined_call_operand.vmem [shape: f32[1,64], index: 7, kind: input, shape index: {}]   ;;  %s2849_s8 = inlined_call_operand.hbm [shape: bf16[64,64], index: 8, kind: input, shape index: {}]   ;;  %s2850_s9 = inlined_call_operand.vmem [shape: f32[1,64], index: 9, kind: input, shape index: {}]   ;;  %s2851_s10 = inlined_call_operand.hbm [shape: bf16[64,64], index: 10, kind: input, shape index: {}]   ;;  %s2852_s11 = inlined_call_operand.vmem [shape: f32[1,64], index: 11, kind: input, shape index: {}]   ;;  %s2853_s12 = inlined_call_operand.vmem [shape: bf16[192,128], index: 12, kind: input, shape index: {}]   ;;  %s2854_s13 = inlined_call_operand.vmem [shape: f32[1,128], index: 13, kind: input, shape index: {}]   ;;  %s2855_s14 = inlined_call_operand.hbm [shape: f32[2,1,128], index: 14, kind: output, shape index: {}]  }
   0x1   :  { %2873 = sst [smem:[#allocation23_spill]] %s2841_s0 }
   0x2   :  { %2874 = sst [smem:[#allocation24_spill]] %s2842_s1 }
   0x3   :  { %2875 = sst [smem:[#allocation25_spill]] %s2843_s2 }
   0x4   :  { %2876 = sst [smem:[#allocation26_spill]] %s2844_s3 }
   0x5   :  { %2877 = sst [smem:[#allocation27_spill]] %s2845_s4 }
   0x6   :  { %2878 = sst [smem:[#allocation28_spill]] %s2846_s5 }
   0x7   :  { %2879 = sst [smem:[#allocation29_spill]] %s2847_s6 }
   0x8   :  { %2880 = sst [smem:[#allocation30_spill]] %s2848_s7 }
   0x9   :  { %2881 = sst [smem:[#allocation31_spill]] %s2849_s8 }
   0xa   :  { %2882 = sst [smem:[#allocation32_spill]] %s2850_s9 }
   0xb   :  { %2883 = sst [smem:[#allocation33_spill]] %s2851_s10 }
   0xc   :  { %2884 = sst [smem:[#allocation34_spill]] %s2852_s11 }
   0xd   :  { %2885 = sst [smem:[#allocation35_spill]] %s2853_s12 }
   0xe   :  { %2886 = sst [smem:[#allocation36_spill]] %s2854_s13 }
   0xf   :  { %2887 = sst [smem:[#allocation37_spill]] %s2855_s14 }
  0x10   :  { %19 = vsyncpa [#allocation4], 0 }
  0x11   :  { %21 = vsyncpa [#allocation4 + $0x1], 0 }
  0x12   :  { %22 = vsyncpa [#allocation7], 0 }
  0x13   :  { %23 = vsyncpa [#allocation10], 0 }
  0x14   :  { %24 = vsyncpa [#allocation5], 0 }
  0x15   :  { %26 = vsyncpa [#allocation5 + $0x1], 0  ;;  %s2364_s29 = smov 0   ;;  %s2366_s30 = smov 0  }
  0x16   :  { %s2368_s15 = smov 0   ;;  %s2370_s16 = smov 0  }
  0x17   :  { %s2372_s17 = smov 0   ;;  %s2374_s18 = smov 0  }
  0x18   :  { %s2376_s19 = smov 0   ;;  %s2378_s20 = smov 0  }
  0x19   :  { %s2380_s21 = smov 0   ;;  %s2382_s22 = smov 0  }
  0x1a   :  { %s2384_s23 = smov 0  }
  0x1b LB: > { %2888 = sst [smem:[#allocation17_spill]] %s2233_s29  ;;  %s1573_s24 = sadd.s32 4294967295, %s2273_s23   ;;  %s2273_s23 = sphi %s2384_s23, %s32_s23   ;;  %s2269_s22 = sphi %s2382_s22, %s2944_s22   ;;  %s2265_s21 = sphi %s2380_s21, %s2943_s21   ;;  %s2261_s20 = sphi %s2378_s20, %s2942_s20   ;;  %s2257_s19 = sphi %s2376_s19, %s2941_s19   ;;  %s2253_s18 = sphi %s2374_s18, %s2940_s18   ;;  %s2249_s17 = sphi %s2372_s17, %s2939_s17   ;;  %s2245_s16 = sphi %s2370_s16, %s2938_s16   ;;  %s2241_s15 = sphi %s2368_s15, %s2937_s15   ;;  %s2237_s30 = sphi %s2366_s30, %s2936_s30   ;;  %s2233_s29 = sphi %s2364_s29, %s2935_s29  }
  0x1c   : > { %2889 = sst [smem:[#allocation18_spill]] %s2257_s19  ;;  %s1574_s25 = sadd.s32 4294967294, %s2273_s23  }
  0x1d   : > { %2890 = sst [smem:[#allocation19_spill]] %s2261_s20  ;;  %p94_p0 = scmp.ne.s32.totalorder %s2249_s17, %s2245_s16 }
  0x1e   : > { %p2420_p1 = scmp.eq.s32.totalorder %s1573_s24, 0  ;;  %p376_p2 = scmp.ne.s32.totalorder %s2241_s15, %s2237_s30 }
  0x1f   : > { %p377_p3 = scmp.eq.s32.totalorder %s1573_s24, 3  ;;  %p382_p5 = scmp.ne.s32.totalorder %s2237_s30, %s2233_s29 }
  0x20   : > { %s2891_s26 = scalar_select %p2420_p1, 1, 0 }
  0x21   : > { %p2428_p4 = por %p2420_p1, %p94_p0  ;;  %p2434_p6 = por %p377_p3, %p376_p2 }
  0x22   : > { %p383_p7 = scmp.eq.s32.totalorder %s1574_s25, 3  ;;  %p1575_p8 = scmp.ge.s32.totalorder %s2273_s23, 1 }
  0x23   : > { %s2892_s27 = scalar_select %p2428_p4, 1, 0 }
  0x24   : > { %s2893_s28 = scalar_select %p2434_p6, 1, 0 }
  0x25   : > { %p390_p9 = scmp.lt.s32.totalorder %s2273_s23, 5  ;;  %p2440_p10 = por %p383_p7, %p382_p5 }
  0x26   : > { %2894 = sst [smem:[#allocation20_spill]] %s2893_s28  ;;  %s2275_s24 = smov [#allocation6]  }
  0x27   : > { %s2895_s16 = scalar_select %p2440_p10, 1, 0 }
  0x28   : > { %p2444_p11 = pnand %p1575_p8, %p390_p9  ;;  %s405_s13 = sshll.u32 %s2275_s24, 4  ;;  %s406_s13 = int_to_ptr.vmem [resolvable:$true] %s405_s13 }
  0x29   : > { %2896 = sst [smem:[#allocation21_spill]] %s2895_s16  ;;  %s2276_s25 = smov [#allocation9]  }
  0x2a   : > { %s2897_s14 = scalar_select %p2444_p11, 1, 0 }
  0x2b   : > { %p1814_p12 = pneg %p2444_p11  ;;  %s437_s28 = sshll.u32 %s2276_s25, 4  ;;  %s2456_s28 = int_to_ptr.vmem [resolvable:$true] %s437_s28 }
  0x2c   : > { %s2899_s4 = sld [smem:[#allocation27_spill]] }
  0x2d   : > { %p2452_p13 = pnand %p1814_p12, %p2420_p1 }
  0x2f   : > { %p2466_p2 = pneg %p2452_p13 }
  0x32   : > { %s2001_s9 = scalar_lea.hbm %s2899_s4, 512 }
  0x33   : > { %p2002_p0 = scmp.ne.s32.totalorder %s2899_s4, %s2001_s9  ;;  %p2008_p7 = scmp.lt.u32.totalorder %s2001_s9, %s2899_s4 }
  0x35   : > { %p2004_p3 = pnand %p2466_p2, %p2002_p0 }
  0x37   : > { %p2005_p5 = pneg %p2004_p3 }
  0x39   : > { %p2010_p8 = pnand %p2008_p7, %p2005_p5 }
  0x3b   : > { %2013 = shalt.err (!%p2010_p8)
}
  0x3c   : > { %s2014_s12 = scalar_lea.vmem %s406_s13, 512  ;;  %p2022_p6 = scmp.lt.s32.totalorder %s406_s13, %s406_s13 }
  0x3d   : > { %p2015_p9 = scmp.ne.s32.totalorder %s406_s13, %s2014_s12  ;;  %p2023_p1 = scmp.lt.s32.totalorder %s2014_s12, %s2014_s12 }
  0x3f   : > { %p2017_p12 = pnand %p2015_p9, %p2466_p2  ;;  %p2024_p4 = por %p2023_p1, %p2022_p6 }
  0x41   : > { %p2018_p10 = pneg %p2017_p12 }
  0x43   : > { %p2025_p11 = pnand %p2024_p4, %p2018_p10 }
  0x45   : > { %2028 = shalt.err (!%p2025_p11)
}
  0x46   : > { %s2870_s7 = smov 64   ;;  %s2871_s11 = smov 4  }
  0x47   : > { %1817 = dma.hbm_to_vmem [thread:$0]  (!%p2452_p13), %s2899_s4, 512, %s406_s13, [#allocation7], %s2870_s7, %s2870_s7, %s2871_s11  }
  0x48   : > { %s2901_s8 = sld [smem:[#allocation31_spill]] }
  0x4e   : > { %s2029_s3 = scalar_lea.hbm %s2901_s8, 512 }
  0x4f   : > { %p2030_p1 = scmp.ne.s32.totalorder %s2901_s8, %s2029_s3  ;;  %p2036_p10 = scmp.lt.u32.totalorder %s2029_s3, %s2901_s8 }
  0x51   : > { %p2032_p4 = pnand %p2030_p1, %p2466_p2 }
  0x53   : > { %p2033_p6 = pneg %p2032_p4 }
  0x55   : > { %p2038_p11 = pnand %p2036_p10, %p2033_p6 }
  0x57   : > { %2041 = shalt.err (!%p2038_p11)
}
  0x58   : > { %s2042_s13 = scalar_lea.vmem %s2456_s28, 512  ;;  %p2050_p7 = scmp.lt.s32.totalorder %s2456_s28, %s2456_s28 }
  0x59   : > { %p2043_p0 = scmp.ne.s32.totalorder %s2456_s28, %s2042_s13  ;;  %p2051_p8 = scmp.lt.s32.totalorder %s2042_s13, %s2042_s13 }
  0x5b   : > { %p2045_p3 = pnand %p2043_p0, %p2466_p2  ;;  %p2052_p9 = por %p2051_p8, %p2050_p7 }
  0x5d   : > { %p2046_p5 = pneg %p2045_p3 }
  0x5f   : > { %p2053_p12 = pnand %p2052_p9, %p2046_p5 }
  0x61   : > { %2056 = shalt.err (!%p2053_p12)
}
  0x62   : > { %1823 = dma.hbm_to_vmem [thread:$0]  (!%p2452_p13), %s2901_s8, 512, %s2456_s28, [#allocation10], %s2870_s7, %s2870_s7, %s2871_s11  }
  0x63   : > { %s2279_s3 = smov [#allocation8]   ;;  %s2280_s5 = smov [#allocation11]  }
  0x64   : > { %s421_s19 = sshll.u32 %s2279_s3, 4  ;;  %s453_s9 = sshll.u32 %s2280_s5, 4  ;;  %s422_s19 = int_to_ptr.vmem [resolvable:$true] %s421_s19  ;;  %s454_s9 = int_to_ptr.vmem [resolvable:$true] %s453_s9 }
  0x65   : > { %s2902_s6 = sld [smem:[#allocation29_spill]] }
  0x6b   : > { %s2057_s12 = scalar_lea.hbm %s2902_s6, 512 }
  0x6c   : > { %p2058_p1 = scmp.ne.s32.totalorder %s2902_s6, %s2057_s12  ;;  %p2064_p10 = scmp.lt.u32.totalorder %s2057_s12, %s2902_s6 }
  0x6e   : > { %p2060_p4 = pnand %p2058_p1, %p2466_p2 }
  0x70   : > { %p2061_p6 = pneg %p2060_p4 }
  0x72   : > { %p2066_p11 = pnand %p2064_p10, %p2061_p6 }
  0x74   : > { %2069 = shalt.err (!%p2066_p11)
}
  0x75   : > { %s2070_s28 = scalar_lea.vmem %s422_s19, 512  ;;  %p2078_p7 = scmp.lt.s32.totalorder %s422_s19, %s422_s19 }
  0x76   : > { %p2071_p0 = scmp.ne.s32.totalorder %s422_s19, %s2070_s28  ;;  %p2079_p8 = scmp.lt.s32.totalorder %s2070_s28, %s2070_s28 }
  0x78   : > { %p2073_p3 = pnand %p2071_p0, %p2466_p2  ;;  %p2080_p9 = por %p2079_p8, %p2078_p7 }
  0x7a   : > { %p2074_p5 = pneg %p2073_p3 }
  0x7c   : > { %p2081_p12 = pnand %p2080_p9, %p2074_p5 }
  0x7e   : > { %2084 = shalt.err (!%p2081_p12)
}
  0x7f   : > { %1820 = dma.hbm_to_vmem [thread:$0]  (!%p2452_p13), %s2902_s6, 512, %s422_s19, [#allocation7], %s2870_s7, %s2870_s7, %s2871_s11  }
  0x80   : > { %s2903_s10 = sld [smem:[#allocation33_spill]] }
  0x86   : > { %s2085_s5 = scalar_lea.hbm %s2903_s10, 512 }
  0x87   : > { %p2086_p1 = scmp.ne.s32.totalorder %s2903_s10, %s2085_s5  ;;  %p2092_p10 = scmp.lt.u32.totalorder %s2085_s5, %s2903_s10 }
  0x89   : > { %p2088_p4 = pnand %p2086_p1, %p2466_p2 }
  0x8b   : > { %p2089_p6 = pneg %p2088_p4 }
  0x8d   : > { %p2094_p11 = pnand %p2092_p10, %p2089_p6 }
  0x8f   : > { %2097 = shalt.err (!%p2094_p11)
}
  0x90   : > { %s2098_s0 = scalar_lea.vmem %s454_s9, 512  ;;  %p2106_p7 = scmp.lt.s32.totalorder %s454_s9, %s454_s9 }
  0x91   : > { %p2099_p0 = scmp.ne.s32.totalorder %s454_s9, %s2098_s0  ;;  %p2107_p8 = scmp.lt.s32.totalorder %s2098_s0, %s2098_s0 }
  0x93   : > { %p2101_p3 = pnand %p2099_p0, %p2466_p2  ;;  %p2108_p9 = por %p2107_p8, %p2106_p7 }
  0x95   : > { %p2102_p5 = pneg %p2101_p3 }
  0x97   : > { %p2109_p12 = pnand %p2108_p9, %p2102_p5 }
  0x99   : > { %2112 = shalt.err (!%p2109_p12)
}
  0x9a   : > { %1826 = dma.hbm_to_vmem [thread:$0]  (!%p2452_p13), %s2903_s10, 512, %s454_s9, [#allocation10], %s2870_s7, %s2870_s7, %s2871_s11  }
  0x9b   : > { %s41_s29 = sadd.s32 1, %s2265_s21  ;;  %s44_s24 = sadd.s32 1, %s2269_s22 }
  0x9c   : > { %p42_p2 = scmp.ge.s32.totalorder %s41_s29, 2  ;;  %s81_s4 = sadd.s32 1, %s2253_s18 }
  0x9d   : > { %p88_p1 = scmp.ne.s32.totalorder %s2253_s18, %s2249_s17  ;;  %p89_p4 = scmp.eq.s32.totalorder %s2273_s23, 0 }
  0x9e   : > { %s2946_s29 = smov (%p42_p2, %s41_s29), 0  ;;  %s2948_s24 = smov (!%p42_p2, %s44_s24), %s2269_s22 }
  0x9f   : > { %2904 = sst [smem:[#allocation22_spill]] %s2946_s29  ;;  %s77_s20 = ssub.s32 %s2265_s21, %s2946_s29 }
  0xa0   : > { %p46_p6 = scmp.ge.s32.totalorder %s2948_s24, 2  ;;  %s366_s2 = sadd.s32 1, %s2241_s15 }
  0xa1   : > { %p2565_p10 = por %p89_p4, %p88_p1  ;;  %p1839_p13 = scmp.lt.s32.totalorder %s2273_s23, 4 }
  0xa2   : > { %s2950_s24 = smov (%p46_p6, %s2948_s24), 0  ;;  %s487_s3 = sand.u32 1, %s2253_s18  }
  0xa3   : > { %s1650_s5 = sshll.u32 %s2265_s21, 3  ;;  %s76_s16 = ssub.s32 %s2269_s22, %s2950_s24 }
  0xa4   : > { %s78_s25 = sor.u32 %s77_s20, %s76_s16  ;;  %p364_p11 = scmp.eq.s32.totalorder %s76_s16, 0 }
  0xa5   : > { %p79_p0 = scmp.eq.s32.totalorder %s78_s25, 0  ;;  %s1581_s12 = sshll.u32 %s487_s3, 5 }
  0xa6   : > { %s2577_s13 = scalar_select %p364_p11, %s2241_s15, %s366_s2  }
  0xa7   : > { %s2580_s0 = scalar_select %p79_p0, %s2253_s18, %s81_s4  }
  0xa8   : > { %s1584_s19 = sshll.u32 %s2269_s22, 4  ;;  %s491_s7 = scalar_lea.vmem [#allocation3], %s1581_s12 }
  0xa9   : > { %s498_s28 = sadd.s32 %s1650_s5, %s1584_s19  ;;  %s501_s11 = sshll.u32 %s491_s7, 4  ;;  %s2583_s11 = int_to_ptr.vmem [resolvable:$true] %s501_s11 }
  0xaa   : > { %s1585_s6 = sshll.u32 %s498_s28, 6  ;;  %s2906_s1 = sld [smem:[#allocation24_spill]] }
  0xab   : > { %p2594_p3 = pnand %p1839_p13, %p2565_p10  ;;  %s2598_s7 = scalar_lea.sflag [#allocation4], %s487_s3 }
  0xad   : > { %p2115_p7 = pneg %p2594_p3 }
  0xb0   : > { %s2588_s29 = scalar_lea.hbm %s2906_s1, %s1585_s6  ;;  %s2118_s10 = scalar_lea.hbm %s2906_s1, 2048 }
  0xb1   : > { %s2113_s20 = scalar_lea.hbm %s2588_s29, 512  ;;  %p2119_p12 = scmp.lt.u32.totalorder %s2588_s29, %s2906_s1 }
  0xb2   : > { %p2114_p5 = scmp.ne.s32.totalorder %s2588_s29, %s2113_s20  ;;  %p2120_p2 = scmp.lt.u32.totalorder %s2118_s10, %s2113_s20 }
  0xb3   : > { %p2122_p4 = scmp.lt.u32.totalorder %s2113_s20, %s2588_s29 }
  0xb4   : > { %p2116_p8 = pnand %p2115_p7, %p2114_p5  ;;  %p2121_p1 = por %p2120_p2, %p2119_p12 }
  0xb6   : > { %p2117_p9 = pneg %p2116_p8  ;;  %p2123_p6 = por %p2122_p4, %p2121_p1 }
  0xb8   : > { %p2124_p10 = pnand %p2123_p6, %p2117_p9 }
  0xba   : > { %2127 = shalt.err (!%p2124_p10)
}
  0xbb   : > { %s2128_s3 = scalar_lea.vmem %s2583_s11, 512  ;;  %s2281_s5 = smov [#allocation3]  }
  0xbc   : > { %p2129_p13 = scmp.ne.s32.totalorder %s2583_s11, %s2128_s3  ;;  %s2133_s16 = sshll.u32 %s2281_s5, 4  ;;  %s2134_s16 = int_to_ptr.vmem [resolvable:$false] %s2133_s16 }
  0xbd   : > { %s2135_s25 = scalar_lea.vmem %s2134_s16, 1024  ;;  %p2136_p5 = scmp.lt.s32.totalorder %s2583_s11, %s2134_s16 }
  0xbe   : > { %p2131_p11 = pnand %p2129_p13, %p2115_p7  ;;  %p2137_p8 = scmp.lt.s32.totalorder %s2135_s25, %s2128_s3 }
  0xc0   : > { %p2132_p0 = pneg %p2131_p11  ;;  %p2138_p12 = por %p2137_p8, %p2136_p5 }
  0xc2   : > { %p2139_p2 = pnand %p2138_p12, %p2132_p0 }
  0xc4   : > { %2142 = shalt.err (!%p2139_p2)
}
  0xc5   : > { %s2908_s12 = smov 4   ;;  %s2909_s19 = smov 64  }
  0xc6   : > { %1830 = dma.hbm_to_vmem [thread:$0]  (!%p2594_p3), %s2588_s29, 512, %s2583_s11, %s2598_s7, %s2909_s19, %s2909_s19, %s2908_s12  }
  0xc7   : > { %p2910_p7 = scmp.ne.s32.totalorder %s2897_s14, 0 }
  0xc8   : > { %s527_s28 = sand.u32 (!%p2910_p7), 1, %s2249_s17   ;;  %p2911_p9 = scmp.ne.s32.totalorder (!%p2910_p7), %s2892_s27, 0 }
  0xc9   : > { %525 = sbr.rel (%p2910_p7) target bundleno = 1768 (0x6e8), region = 76  ;;  %s1587_s20 = sshll.u32 (!%p2910_p7), %s527_s28, 5 }
  0xca   : > { %s528_s6 = scalar_lea.sflag (!%p2910_p7), [#allocation4], %s527_s28  ;;  %s2632_s8 = scalar_lea.vmem (!%p2910_p7), [#allocation3], %s1587_s20 }
  0xd0   : > { %2216 = dma.done.wait (%p2911_p9), %s528_s6, 512  }
  0xd1   : > { %2218 = vsyncadd (%p2911_p9), %s528_s6, 4294966784  ;;  %p2912_p1 = scmp.ne.s32.totalorder %s2891_s26, 0 }
  0xd3   : > { %2220 = dma.done.wait (%p2912_p1), [#allocation7], 1024  }
  0xd4   : > { %2222 = vsyncadd (%p2912_p1), [#allocation7], 4294966272 }
  0xd5   : > { %2224 = dma.done.wait (%p2912_p1), [#allocation10], 1024  }
  0xd6   : > { %2226 = vsyncadd (%p2912_p1), [#allocation10], 4294966272  ;;  %s2913_s14 = sld [smem:[#allocation19_spill]]  ;;  %s2914_s11 = sld [smem:[#allocation18_spill]] }
  0xd7   : > { %s606_s27 = sand.u32 1, %s2237_s30   ;;  %s2915_s16 = sld [smem:[#allocation23_spill]] }
  0xd8   : > { %s2916_s20 = sld [smem:[#allocation25_spill]]  ;;  %s2663_s1 = scalar_lea.vmem [#allocation12], %s606_s27 }
  0xdc   : > { %p608_p3 = scmp.lt.s32.totalorder %s2913_s14, 1  ;;  %p610_p4 = scmp.lt.s32.totalorder %s2914_s11, 1 }
  0xdd   : > { %p1597_p6 = scmp.ne.s32.totalorder %s2914_s11, 0 }
  0xde   : > { %s2952_s14 = smov (!%p608_p3, %s2913_s14), 1  ;;  %vm631_vm0 = vcmask (!%p1597_p6), 518144   ;;  %v2282_v0 = vmov (!%p1597_p6), -inf  }
  0xdf   : > { %s611_s29 = scalar_select %p610_p4, %s2914_s11, 1 }
  0xe0   : > { %s1592_s4 = sshll.u32 %s2952_s14, 1  ;;  %s1595_s7 = sshll.u32 %s2952_s14, 2  ;;  %632 = vst.msk [vmem:[#allocation2] sm:$0x7] (!%p1597_p6), %vm631_vm0, %v2282_v0 }
  0xe1   : > { %s613_s10 = sadd.s32 %s1592_s4, %s611_s29  ;;  %s1594_s2 = sshll.u32 %s611_s29, 1 }
  0xe2   : > { %s1593_s9 = sshll.u32 %s613_s10, 2  ;;  %s623_s3 = sadd.s32 %s1595_s7, %s1594_s2 }
  0xe3   : > { %s2654_s25 = scalar_lea.vmem %s2915_s16, %s1593_s9  ;;  %s1596_s12 = sshll.u32 %s623_s3, 2 }
  0xe4   : > { %s2659_s6 = scalar_lea.vmem %s2916_s20, %s1596_s12  ;;  %630 = sbr.rel (%p1597_p6) target bundleno = 235 (0xeb), region = 100 }
  0xeb PF: > { %v1946_v1 = vld [vmem:[#allocation6] sm:$0xff]   ;;  %v1947_v2 = vld [vmem:[#allocation6 + $0x8] sm:$0xff]   ;;  %v1948_v3 = vld [vmem:[#allocation6 + $0x10] sm:$0xff]   ;;  %s2917_s29 = sld [smem:[#allocation26_spill]]  ;;  %vm710_vm1 = vcmask 523264   ;;  %v2283_v27 = vmov 0.0  }
  0xec   : > { %1694 = vmatprep.subr.bf16.mxu0 %v1946_v1  ;;  %v633_v4 = vld [vmem:[%s2632_s8] sm:$0xf]  ;;  %v634_v5 = vld [vmem:[%s2632_s8 + $0x4] sm:$0xf]  ;;  %v1949_v9 = vld [vmem:[#allocation6 + $0x18] sm:$0xff]   ;;  %1710 = vmatprep.subr.bf16.mxu1 %v2283_v27  ;;  %vm2284_vm2 = vmmov 0  }
  0xed   : > { %1695 = vmatpush3.bf16.msra.mxu0 %v1946_v1  ;;  %v635_v11 = vld [vmem:[%s2632_s8 + $0x8] sm:$0xf]  ;;  %v636_v12 = vld [vmem:[%s2632_s8 + $0xc] sm:$0xf]  ;;  %v637_v13 = vld [vmem:[%s2632_s8 + $0x10] sm:$0xf]  ;;  %1718 = vmatprep.mubr.msk.bf16.mxu1 %vm2284_vm2, %v2283_v27 }
  0xee   : > { %1696 = vmatprep.subr.bf16.mxu0 %v1947_v2  ;;  %v638_v14 = vld [vmem:[%s2632_s8 + $0x14] sm:$0xf]  ;;  %v639_v20 = vld [vmem:[%s2632_s8 + $0x18] sm:$0xf]  ;;  %v640_v21 = vld [vmem:[%s2632_s8 + $0x1c] sm:$0xf] }
  0xef   : > { %v1951_v28 = vld [vmem:[#allocation8] sm:$0xff]   ;;  %v1952_v29 = vld [vmem:[#allocation8 + $0x8] sm:$0xff]   ;;  %v1953_v30 = vld [vmem:[#allocation8 + $0x10] sm:$0xff]   ;;  %s2919_s9 = sld [smem:[#allocation28_spill]]  ;;  %v2285_v63 = vmov 0   ;;  %s2920_s26 = sld [smem:[#allocation30_spill]] }
  0xf0   : > { %v1954_v31 = vld [vmem:[#allocation8 + $0x18] sm:$0xff]   ;;  %v1950_v61 = vld [vmem:[%s2659_s6] sm:$0x3f]   ;;  %1945 = vset.pattern.permute.xlu0 %v2285_v63  ;;  %v1955_v1 = vld [vmem:[#allocation11] sm:$0xff]   ;;  %s2921_s12 = sld [smem:[#allocation34_spill]]  ;;  %vm1115_vm3 = vcmask 519168  }
  0xf1   : > { %s2918_s4 = smov %s2917_s29  ;;  %v641_v6 = vld [vmem:[%s2917_s29] sm:$0xf]  ;;  %1697 = vmatpush3.bf16.msra.mxu0 %v1947_v2  ;;  %vm1141_vm4 = vcmask 523268   ;;  %vm1124_vm5 = vcmask 516096   ;;  %s2922_s20 = sld [smem:[#allocation32_spill]] }
  0xf2   : > { %v642_v7 = vld [vmem:[%s2918_s4 + $0x4] sm:$0xf]  ;;  %v643_v8 = vadd.bf16 %v641_v6, %v633_v4  ;;  %1698 = vmatprep.subr.bf16.mxu0 %v1948_v3  ;;  %v645_v16 = vadd.bf16 %v641_v6, %v635_v11  ;;  %v647_v18 = vadd.bf16 %v641_v6, %v637_v13  ;;  %v649_v24 = vadd.bf16 %v641_v6, %v639_v20  ;;  %v1107_v62 = vld [vmem:[%s2654_s25] sm:$0xf]  ;;  %v1958_v11 = vld [vmem:[#allocation11 + $0x18] sm:$0xff]   ;;  %s2923_s6 = sld [smem:[#allocation18_spill]] }
  0xf3   : > { %v644_v10 = vadd.bf16 %v642_v7, %v634_v5  ;;  %v646_v17 = vadd.bf16 %v642_v7, %v636_v12  ;;  %v648_v19 = vadd.bf16 %v642_v7, %v638_v14  ;;  %v650_v25 = vadd.bf16 %v642_v7, %v640_v21  ;;  %1111 = vperm.xlu0 %1945, %v1107_v62   ;;  %v1959_v13 = vld [vmem:[#allocation9] sm:$0xff]   ;;  %v1960_v14 = vld [vmem:[#allocation9 + $0x8] sm:$0xff]  }
  0xf5   : > { %v1599_v15 = vcombine.low %v643_v8, %v644_v10  ;;  %1699 = vmatpush3.bf16.msra.mxu0 %v1948_v3  ;;  %v1600_v22 = vcombine.low %v645_v16, %v646_v17  ;;  %v1601_v23 = vcombine.low %v647_v18, %v648_v19  ;;  %v1602_v26 = vcombine.low %v649_v24, %v650_v25  ;;  %v1598_v32 = vld [vmem:[%s2919_s9] ss:$0 sm:$0xff]  ;;  %v1957_v10 = vld [vmem:[#allocation11 + $0x10] sm:$0xff]   ;;  %v1962_v16 = vld [vmem:[#allocation9 + $0x18] sm:$0xff]  }
  0xf6   : > { %1700 = vmatprep.subr.bf16.mxu0 %v1949_v9  ;;  %v1956_v8 = vld [vmem:[#allocation11 + $0x8] sm:$0xff]  }
  0xf7   : > { %1702 = vmatprep.mubr.msk.bf16.mxu0 %vm710_vm1, %v1599_v15  ;;  %v1961_v15 = vld [vmem:[#allocation9 + $0x10] sm:$0xff]   ;;  %v1613_v17 = vld [vmem:[%s2920_s26] ss:$0 sm:$0xff] }
  0xf8   : > { %v1625_v25 = vld [vmem:[%s2921_s12] ss:$0 sm:$0xff]  ;;  %p1631_p10 = scmp.ne.s32.totalorder %s2923_s6, 1 }
  0xf9   : > { %1701 = vmatpush3.bf16.msra.mxu0 %v1949_v9  ;;  %s2924_s29 = sld [smem:[#allocation35_spill]] (!%p1631_p10)  ;;  %vm2287_vm6 = vmmov (!%p1631_p10), 0   ;;  %s2926_s16 = sld [smem:[#allocation36_spill]] (!%p1631_p10)  ;;  %vm1389_vm7 = vcmask (!%p1631_p10), 1040384  }
  0xfa   : > { %1722 = vmatprep.subr.bf16.mxu0 %v2283_v27 }
  0xfc   : > { %1703 = vmatmul.mubr.msk.bf16.vlgmr.msra.gmra.mrb[0].mxu0 %vm710_vm1, %v1600_v22 }
  0xfd   : > { %1706 = vmatprep.mubr.msk.bf16.mxu0 %vm710_vm1, %v1601_v23  ;;  %1723 = vmatpush3.bf16.msra.mxu0 %v1951_v28 }
  0xfe   : > { %1724 = vmatprep.subr.bf16.mxu0 %v2283_v27 }
  0xff   : > { %s2925_s7 = smov (!%p1631_p10), %s2924_s29 }
 0x101   : > { %1725 = vmatpush3.bf16.msra.mxu0 %v1952_v29 }
 0x102   : > { %1726 = vmatprep.subr.bf16.mxu0 %v2283_v27 }
 0x104   : > { %1707 = vmatmul.mubr.msk.bf16.gmra.mrb[4].mxu0 %vm710_vm1, %v1602_v26 }
 0x105   : > { %1730 = vmatprep.mubr.msk.bf16.mxu0 %vm2284_vm2, %v2283_v27  ;;  %1727 = vmatpush3.bf16.msra.mxu0 %v1953_v30 }
 0x106   : > { %1728 = vmatprep.subr.bf16.mxu0 %v2283_v27 }
 0x109   : > { %1729 = vmatpush3.bf16.msra.mxu0 %v1954_v31 }
 0x10a   : > { %1746 = vmatprep.subr.bf16.mxu0 %v2283_v27 }
 0x172   : > { %v1112_v31 = vpop.permute.xlu0 %1111 }
 0x1cf   : > { %v1704_v33 = vpop.f32.mrb[0].mxu0 }
 0x1d0   : > { %v766_v34 = vadd.f32 %v1704_v33, %v1598_v32  ;;  %v757_v35 = vpop.f32.mrb[1].mxu0 }
 0x1d1   : > { %v758_v36 = vadd.f32 %v1598_v32, %v757_v35  ;;  %v1705_v37 = vpop.f32.mrb[2].mxu0 }
 0x1d2   : > { %1963 = vtanh.f32 %v766_v34  ;;  %v769_v38 = vadd.f32 %v1705_v37, %v1598_v32  ;;  %v760_v39 = vpop.f32.mrb[3].mxu0 }
 0x1d3   : > { %1965 = vtanh.f32 %v758_v36  ;;  %v761_v40 = vadd.f32 %v1598_v32, %v760_v39 }
 0x1d4   : > { %1967 = vtanh.f32 %v769_v38 }
 0x1d5   : > { %1969 = vtanh.f32 %v761_v40 }
 0x1d7   : > { %v1708_v41 = vpop.f32.mrb[4].mxu0 }
 0x1d8   : > { %v782_v42 = vadd.f32 %v1708_v41, %v1598_v32  ;;  %v773_v43 = vpop.f32.mrb[5].mxu0 }
 0x1d9   : > { %v774_v44 = vadd.f32 %v1598_v32, %v773_v43  ;;  %v1709_v45 = vpop.f32.mrb[6].mxu0 }
 0x1da   : > { %1971 = vtanh.f32 %v782_v42  ;;  %v785_v46 = vadd.f32 %v1709_v45, %v1598_v32  ;;  %v776_v47 = vpop.f32.mrb[7].mxu0 }
 0x1db   : > { %1973 = vtanh.f32 %v774_v44  ;;  %v777_v48 = vadd.f32 %v1598_v32, %v776_v47  ;;  %v1138_v32 = vrot.slane %v1112_v31, 4 }
 0x1dc   : > { %v1964_v49 = vpop.eup %1963  ;;  %1975 = vtanh.f32 %v785_v46 }
 0x1dd   : > { %v1966_v50 = vpop.eup %1965  ;;  %1977 = vtanh.f32 %v777_v48  ;;  %v1126_v48 = vld [vmem:[#allocation2 + $0x1] sm:$0x1] }
 0x1de   : > { %v1968_v51 = vpop.eup %1967 }
 0x1df   : > { %v1970_v52 = vpop.eup %1969  ;;  %v797_v53 = vpack.c.bf16 %v1968_v51, %v1964_v49  ;;  %v1137_v49 = vld [vmem:[#allocation2 + $0x2] sm:$0x1] }
 0x1e0   : > { %v796_v54 = vpack.c.bf16 %v1970_v52, %v1966_v50 }
 0x1e2   : > { %1711 = vmatpush3.bf16.msra.mxu1 %v796_v54  ;;  %v1619_v54 = vld [vmem:[%s2922_s20] ss:$0 sm:$0xff] }
 0x1e3   : > { %1712 = vmatprep.subr.bf16.mxu1 %v2283_v27 }
 0x1e4   : > { %v1972_v55 = vpop.eup %1971 }
 0x1e5   : > { %v1974_v56 = vpop.eup %1973 }
 0x1e6   : > { %v1976_v57 = vpop.eup %1975  ;;  %1713 = vmatpush3.bf16.msra.mxu1 %v797_v53 }
 0x1e7   : > { %v1978_v58 = vpop.eup %1977  ;;  %1714 = vmatprep.subr.bf16.mxu1 %v2283_v27  ;;  %v799_v59 = vpack.c.bf16 %v1976_v57, %v1972_v55 }
 0x1e8   : > { %v798_v60 = vpack.c.bf16 %v1978_v58, %v1974_v56 }
 0x1ea   : > { %1715 = vmatpush3.bf16.msra.mxu1 %v798_v60 }
 0x1eb   : > { %1716 = vmatprep.subr.bf16.mxu1 %v2283_v27 }
 0x1ee   : > { %1717 = vmatpush3.bf16.msra.mxu1 %v799_v59 }
 0x1ef   : > { %1734 = vmatprep.subr.bf16.mxu1 %v2283_v27 }
 0x1f1   : > { %1719 = vmatmul.mubr.msk.bf16.vlgmr.msra.gmra.mrb[0].mxu1 %vm710_vm1, %v1950_v61 }
 0x1f2   : > { %1742 = vmatprep.mubr.msk.bf16.mxu1 %vm2284_vm2, %v2283_v27  ;;  %1735 = vmatpush3.bf16.msra.mxu1 %v1959_v13  ;;  %v1990_v13 = vld [vmem:[%s2925_s7 + $0x10] sm:$0xff] (!%p1631_p10)  }
 0x1f3   : > { %1736 = vmatprep.subr.bf16.mxu1 %v2283_v27 }
 0x1f6   : > { %1737 = vmatpush3.bf16.msra.mxu1 %v1960_v14 }
 0x1f7   : > { %1738 = vmatprep.subr.bf16.mxu1 %v2283_v27 }
 0x1fa   : > { %1739 = vmatpush3.bf16.msra.mxu1 %v1961_v15 }
 0x1fb   : > { %1740 = vmatprep.subr.bf16.mxu1 %v2283_v27 }
 0x1fe   : > { %1741 = vmatpush3.bf16.msra.mxu1 %v1962_v16  ;;  %v1991_v16 = vld [vmem:[%s2925_s7 + $0x38] sm:$0xff] (!%p1631_p10)  }
 0x2c4   : > { %v844_v0 = vpop.f32.mrb[0].mxu1 }
 0x2c5   : > { %v851_v2 = vpack.c.bf16 %v844_v0, %v844_v0  ;;  %v1720_v3 = vpop.f32.mrb[1].mxu1  ;;  %v852_v5 = vmul.f32 0.0625, %v844_v0 }
 0x2c6   : > { %v847_v4 = vpop.f32.mrb[2].mxu1 }
 0x2c7   : > { %v853_v6 = vmul.f32 0.0625, %v847_v4  ;;  %v1721_v7 = vpop.f32.mrb[3].mxu1  ;;  %1731 = vmatmul.mubr.msk.bf16.vlgmr.msra.gmra.mrb[8].mxu0 %vm710_vm1, %v851_v2  ;;  %v1108_v4 = vld [vmem:[#allocation2] sm:$0x1] }
 0x2c8   : > { %1747 = vmatpush3.bf16.msra.mxu0 %v1955_v1  ;;  %1754 = vmatprep.mubr.msk.bf16.mxu0 %vm2284_vm2, %v2283_v27  ;;  %v1985_v7 = vld [vmem:[%s2924_s29 + $0x20] sm:$0xff] (!%p1631_p10)  }
 0x2c9   : > { %v1021_v9 = vpack.c.bf16 %v853_v6, %v852_v5  ;;  %1748 = vmatprep.subr.bf16.mxu0 %v2283_v27 }
 0x2cb   : > { %v1038_v12 = vrot.slane %v1021_v9, 2  ;;  %v1986_v9 = vld [vmem:[%s2925_s7] sm:$0xff] (!%p1631_p10)  }
 0x2cc   : > { %1749 = vmatpush3.bf16.msra.mxu0 %v1956_v8  ;;  %v2286_v8 = vmov (!%p1631_p10), 0.0  }
 0x2cd   : > { %1750 = vmatprep.subr.bf16.mxu0 %v2283_v27  ;;  %1770 = vmatprep.subr.bf16.mxu1 (!%p1631_p10), %v2286_v8 }
 0x2d0   : > { %1751 = vmatpush3.bf16.msra.mxu0 %v1957_v10  ;;  %v1987_v10 = vld [vmem:[%s2925_s7 + $0x28] sm:$0xff] (!%p1631_p10)  }
 0x2d1   : > { %1752 = vmatprep.subr.bf16.mxu0 %v2283_v27 }
 0x2d4   : > { %1753 = vmatpush3.bf16.msra.mxu0 %v1958_v11  ;;  %v1988_v11 = vld [vmem:[%s2925_s7 + $0x8] sm:$0xff] (!%p1631_p10)  }
 0x2d5   : > { %1758 = vmatprep.subr.bf16.mxu0 (!%p1631_p10), %v2286_v8 }
 0x2d7   : > { %1755 = vmatmul.mubr.msk.bf16.vlgmr.msra.gmra.mrb[12].mxu0 %vm710_vm1, %v1038_v12  ;;  %v1989_v12 = vld [vmem:[%s2925_s7 + $0x30] sm:$0xff] (!%p1631_p10)  }
 0x2d8   : > { %1759 = vmatpush3.bf16.msra.mxu0 (!%p1631_p10), %v1985_v7  ;;  %1766 = vmatprep.mubr.msk.bf16.mxu0 (!%p1631_p10), %vm2287_vm6, %v2286_v8 }
 0x2d9   : > { %1760 = vmatprep.subr.bf16.mxu0 (!%p1631_p10), %v2286_v8 }
 0x2dc   : > { %1761 = vmatpush3.bf16.msra.mxu0 (!%p1631_p10), %v1987_v10 }
 0x2dd   : > { %1762 = vmatprep.subr.bf16.mxu0 (!%p1631_p10), %v2286_v8 }
 0x2e0   : > { %1763 = vmatpush3.bf16.msra.mxu0 (!%p1631_p10), %v1989_v12 }
 0x2e1   : > { %1764 = vmatprep.subr.bf16.mxu0 (!%p1631_p10), %v2286_v8 }
 0x2e4   : > { %1765 = vmatpush3.bf16.msra.mxu0 (!%p1631_p10), %v1991_v16 }
 0x2e5   : > { %1782 = vmatprep.subr.bf16.mxu0 (!%p1631_p10), %v2286_v8 }
 0x39a   : > { %v930_v18 = vpop.f32.mrb[8].mxu0 }
 0x39b   : > { %v931_v19 = vadd.f32 %v1613_v17, %v930_v18  ;;  %v1732_v20 = vpop.f32.mrb[9].mxu0  ;;  %v1992_v17 = vld [vmem:[%s2925_s7 + $0x18] sm:$0xff] (!%p1631_p10)  }
 0x39c   : > { %v933_v21 = vpop.f32.mrb[10].mxu0  ;;  %v1994_v20 = vld [vmem:[%s2925_s7 + $0x48] sm:$0xff] (!%p1631_p10)  }
 0x39d   : > { %1979 = vtanh.f32 %v931_v19  ;;  %v1733_v22 = vpop.f32.mrb[11].mxu0  ;;  %v1993_v19 = vld [vmem:[%s2925_s7 + $0x40] sm:$0xff] (!%p1631_p10)   ;;  %v1995_v21 = vld [vmem:[%s2925_s7 + $0x50] sm:$0xff] (!%p1631_p10)  }
 0x39e   : > { %v1996_v22 = vld [vmem:[%s2925_s7 + $0x58] sm:$0xff] (!%p1631_p10)  }
 0x3a7   : > { %v1980_v23 = vpop.eup %1979 }
 0x3a8   : > { %v937_v24 = vpack.c.bf16 %v1980_v23, %v1980_v23 }
 0x3aa   : > { %v1100_v26 = vpop.f32.mrb[12].mxu0  ;;  %1743 = vmatmul.mubr.msk.bf16.vlgmr.msra.gmra.mrb[4].mxu1 %vm710_vm1, %v937_v24 }
 0x3ab   : > { %v1101_v27 = vadd.f32 %v1625_v25, %v1100_v26  ;;  %v1756_v28 = vpop.f32.mrb[13].mxu0  ;;  %1771 = vmatpush3.bf16.msra.mxu1 (!%p1631_p10), %v1986_v9  ;;  %1778 = vmatprep.mubr.msk.bf16.mxu1 (!%p1631_p10), %vm2287_vm6, %v2286_v8 }
 0x3ac   : > { %v1103_v29 = vpop.f32.mrb[14].mxu0  ;;  %1772 = vmatprep.subr.bf16.mxu1 (!%p1631_p10), %v2286_v8 }
 0x3ad   : > { %1981 = vtanh.f32 %v1101_v27  ;;  %v1757_v30 = vpop.f32.mrb[15].mxu0 }
 0x3af   : > { %1773 = vmatpush3.bf16.msra.mxu1 (!%p1631_p10), %v1988_v11 }
 0x3b0   : > { %1774 = vmatprep.subr.bf16.mxu1 (!%p1631_p10), %v2286_v8 }
 0x3b3   : > { %1775 = vmatpush3.bf16.msra.mxu1 (!%p1631_p10), %v1990_v13 }
 0x3b4   : > { %1776 = vmatprep.subr.bf16.mxu1 (!%p1631_p10), %v2286_v8 }
 0x3b7   : > { %v1982_v33 = vpop.eup %1981  ;;  %1777 = vmatpush3.bf16.msra.mxu1 (!%p1631_p10), %v1992_v17 }
 0x3b8   : > { %v1127_v34 = vadd.f32 %v1982_v33, %v1112_v31  ;;  %v1140_v35 = vadd.f32 %v1982_v33, %v1138_v32 }
 0x3ba   : > { %v1128_v36 = vsel %vm1115_vm3, %v1127_v34, -inf  ;;  %v1142_v37 = vsel %vm1141_vm4, %v1140_v35, -inf  ;;  %v1387_v34 = vld [vmem:[%s2926_s16] sm:$0x1] (!%p1631_p10) }
 0x3bb   : > { %v1129_v38 = vrot.slane %v1128_v36, 4  ;;  %v1143_v39 = vrot.slane %v1142_v37, 4 }
 0x3bd   : > { %v1130_v40 = vmax.f32 %v1128_v36, %v1129_v38  ;;  %v1144_v41 = vmax.f32 %v1142_v37, %v1143_v39 }
 0x3bf   : > { %v1131_v42 = vrot.slane %v1130_v40, 2  ;;  %v1145_v43 = vrot.slane %v1144_v41, 2 }
 0x3c1   : > { %v1132_v44 = vmax.f32 %v1130_v40, %v1131_v42  ;;  %v1146_v45 = vmax.f32 %v1144_v41, %v1145_v43 }
 0x3c3   : > { %v1133_v46 = vrot.slane %v1132_v44, 1  ;;  %v1147_v47 = vrot.slane %v1146_v45, 1 }
 0x3c5   : > { %v1134_v50 = vmax.f32 %v1132_v44, %v1133_v46  ;;  %v1148_v51 = vmax.f32 %v1146_v45, %v1147_v47 }
 0x3c7   : > { %v1135_v52 = vmax.f32 %v1126_v48, %v1134_v50  ;;  %v1149_v53 = vmax.f32 %v1137_v49, %v1148_v51 }
 0x3c9   : > { %1136 = vst.msk [vmem:[#allocation2 + $0x1] sm:$0x1] %vm1124_vm5, %v1135_v52  ;;  %1150 = vst.msk [vmem:[#allocation2 + $0x2] sm:$0x1] %vm1124_vm5, %v1149_v53 }
 0x47d   : > { %v1014_v55 = vpop.f32.mrb[4].mxu1 }
 0x47e   : > { %v1015_v56 = vadd.f32 %v1619_v54, %v1014_v55  ;;  %v1744_v57 = vpop.f32.mrb[5].mxu1 }
 0x47f   : > { %v1017_v58 = vpop.f32.mrb[6].mxu1 }
 0x480   : > { %1983 = vtanh.f32 %v1015_v56  ;;  %v1745_v59 = vpop.f32.mrb[7].mxu1 }
 0x48a   : > { %v1984_v60 = vpop.eup %1983 }
 0x48b   : > { %v1114_v61 = vadd.f32 %v1984_v60, %v1112_v31 }
 0x48d   : > { %v1116_v62 = vsel %vm1115_vm3, %v1114_v61, -inf }
 0x48e   : > { %v1117_v63 = vrot.slane %v1116_v62, 4 }
 0x490   : > { %v1118_v0 = vmax.f32 %v1116_v62, %v1117_v63 }
 0x492   : > { %v1119_v1 = vrot.slane %v1118_v0, 2 }
 0x494   : > { %v1120_v2 = vmax.f32 %v1118_v0, %v1119_v1 }
 0x496   : > { %v1121_v3 = vrot.slane %v1120_v2, 1  ;;  %1154 = sbr.rel (%p1631_p10) target bundleno = 1741 (0x6cd), region = 104 }
 0x498   : > { %v1122_v5 = vmax.f32 %v1120_v2, %v1121_v3 }
 0x49a   : > { %v1123_v6 = vmax.f32 %v1108_v4, %v1122_v5 }
 0x49c   : > { %1125 = vst.msk [vmem:[#allocation2] sm:$0x1] %vm1124_vm5, %v1123_v6 }
 0x4a3   : > { %v1155_v14 = vld [vmem:[#allocation2] sm:$0x7] }
 0x4a4   : > { %v1156_v15 = vpack.c.bf16 %v1155_v14, %v1155_v14 }
 0x4a6   : > { %v1174_v18 = vshrl.u32 %v1156_v15, 16  ;;  %1779 = vmatmul.mubr.msk.bf16.vlgmr.msra.gmra.mrb[0].mxu1 %vm710_vm1, %v1156_v15  ;;  %v1318_v23 = vrot.slane %v1156_v15, 1 }
 0x4a8   : > { %1767 = vmatmul.mubr.msk.bf16.vlgmr.msra.gmra.mrb[0].mxu0 %vm710_vm1, %v1174_v18 }
 0x4a9   : > { %1783 = vmatpush3.bf16.msra.mxu0 %v1993_v19  ;;  %1790 = vmatprep.mubr.msk.bf16.mxu0 %vm2287_vm6, %v2286_v8 }
 0x4aa   : > { %1784 = vmatprep.subr.bf16.mxu0 %v2286_v8 }
 0x4ad   : > { %1785 = vmatpush3.bf16.msra.mxu0 %v1994_v20 }
 0x4ae   : > { %1786 = vmatprep.subr.bf16.mxu0 %v2286_v8 }
 0x4b1   : > { %1787 = vmatpush3.bf16.msra.mxu0 %v1995_v21 }
 0x4b2   : > { %1788 = vmatprep.subr.bf16.mxu0 %v2286_v8 }
 0x4b5   : > { %1789 = vmatpush3.bf16.msra.mxu0 %v1996_v22 }
 0x4b8   : > { %1791 = vmatmul.mubr.msk.bf16.vlgmr.msra.gmra.mrb[4].mxu0 %vm710_vm1, %v1318_v23 }
 0x579   : > { %v1303_v26 = vpop.f32.mrb[0].mxu1 }
 0x57a   : > { %v1780_v29 = vpop.f32.mrb[1].mxu1 }
 0x57b   : > { %v1237_v24 = vpop.f32.mrb[0].mxu0  ;;  %v1306_v31 = vpop.f32.mrb[2].mxu1 }
 0x57c   : > { %v1768_v25 = vpop.f32.mrb[1].mxu0  ;;  %v1304_v27 = vadd.f32 %v1303_v26, %v1237_v24  ;;  %v1781_v32 = vpop.f32.mrb[3].mxu1 }
 0x57d   : > { %v1240_v28 = vpop.f32.mrb[2].mxu0 }
 0x57e   : > { %v1769_v30 = vpop.f32.mrb[3].mxu0 }
 0x58b   : > { %v1380_v33 = vpop.f32.mrb[4].mxu0 }
 0x58c   : > { %v1386_v35 = vadd.f32 %v1380_v33, %v1304_v27  ;;  %v1792_v36 = vpop.f32.mrb[5].mxu0 }
 0x58d   : > { %v1383_v37 = vpop.f32.mrb[6].mxu0 }
 0x58e   : > { %v1793_v38 = vpop.f32.mrb[7].mxu0  ;;  %v1388_v39 = vadd.f32 %v1387_v34, %v1386_v35 }
 0x590   : > { %v1390_v40 = vsel %vm1389_vm7, %v1388_v39, -inf }
 0x591   : > { %1391 = vmax.xlane.f32.xlu0 %v1390_v40 }
 0x61e   : > { %v1392_v41 = vpop.xlane.xlu0 %1391 }
 0x61f   : > { %v1393_v42 = vsub.f32 %v1388_v39, %v1392_v41 }
 0x621   : > { %v1394_v43 = vmul.f32 1.442695, %v1393_v42 }
 0x623   : > { %1997 = vpow2.f32 %v1394_v43 }
 0x62d   : > { %v1998_v44 = vpop.eup %1997 }
 0x62e   : > { %v1396_v45 = vsel %vm1389_vm7, %v1998_v44, 0.0 }
 0x62f   : > { %1397 = vadd.xlane.f32.xlu0 %v1396_v45 }
 0x6bc   : > { %v1398_v46 = vpop.xlane.xlu0 %1397 }
 0x6bd   : > { %1999 = vlog2.f32 %v1398_v46 }
 0x6c7   : > { %v2000_v47 = vpop.eup %1999 }
 0x6c8   : > { %v1400_v48 = vmul.f32 0.6931472, %v2000_v47 }
 0x6ca   : > { %v1401_v49 = vsub.f32 %v1393_v42, %v1400_v48 }
 0x6cc   : > { %1402 = vst [vmem:[%s2663_s1] sm:$0x1] %v1401_v49 }
 0x6cd PF: > { %s2927_s25 = sld [smem:[#allocation19_spill]]  ;;  %s2928_s12 = sld [smem:[#allocation20_spill]] }
 0x6ce   : > { %s2929_s6 = sld [smem:[#allocation37_spill]]  ;;  %s1416_s11 = sshll.u32 %s2663_s1, 4  ;;  %s1417_s11 = int_to_ptr.vmem [resolvable:$true] %s1416_s11 }
 0x6cf   : > { %s1404_s29 = scalar_lea.sflag [#allocation5], %s606_s27  ;;  %s2143_s10 = scalar_lea.vmem %s1417_s11, 16 }
 0x6d0   : > { %p2144_p13 = scmp.ne.s32.totalorder %s1417_s11, %s2143_s10  ;;  %s2288_s8 = smov [#allocation12]  }
 0x6d1   : > { %s2147_s2 = sshll.u32 %s2288_s8, 4  ;;  %s2148_s2 = int_to_ptr.vmem [resolvable:$false] %s2147_s2 }
 0x6d2   : > { %s2149_s9 = scalar_lea.vmem %s2148_s2, 32  ;;  %p2150_p8 = scmp.lt.s32.totalorder %s1417_s11, %s2148_s2 }
 0x6d3   : > { %s1647_s19 = sshll.u32 %s2927_s25, 4  ;;  %p2930_p11 = scmp.ne.s32.totalorder %s2928_s12, 0 }
 0x6d4   : > { %s2782_s14 = scalar_lea.hbm %s2929_s6, %s1647_s19  ;;  %p2151_p12 = scmp.lt.s32.totalorder %s2149_s9, %s2143_s10 }
 0x6d5   : > { %p2145_p0 = pnand %p2144_p13, %p2930_p11 }
 0x6d6   : > { %p2152_p2 = por %p2151_p12, %p2150_p8 }
 0x6d7   : > { %p2146_p5 = pneg %p2145_p0 }
 0x6d9   : > { %p2153_p7 = pnand %p2152_p2, %p2146_p5 }
 0x6db   : > { %2156 = shalt.err (!%p2153_p7)
}
 0x6dc   : > { %s2157_s1 = scalar_lea.hbm %s2782_s14, 16  ;;  %s2161_s5 = scalar_lea.hbm %s2929_s6, 32 }
 0x6dd   : > { %p2158_p9 = scmp.ne.s32.totalorder %s2782_s14, %s2157_s1  ;;  %p2162_p4 = scmp.lt.u32.totalorder %s2782_s14, %s2929_s6 }
 0x6de   : > { %p2163_p6 = scmp.lt.u32.totalorder %s2161_s5, %s2157_s1  ;;  %p2165_p13 = scmp.lt.u32.totalorder %s2157_s1, %s2782_s14 }
 0x6df   : > { %p2159_p1 = pnand %p2158_p9, %p2930_p11 }
 0x6e0   : > { %p2164_p10 = por %p2163_p6, %p2162_p4 }
 0x6e1   : > { %p2160_p3 = pneg %p2159_p1 }
 0x6e2   : > { %p2166_p0 = por %p2165_p13, %p2164_p10 }
 0x6e4   : > { %p2167_p5 = pnand %p2166_p0, %p2160_p3 }
 0x6e6   : > { %2170 = shalt.err (!%p2167_p5)
}
 0x6e7   : > { %1812 = dma.vmem_to_hbm [thread:$0]  (%p2930_p11), %s1417_s11, 16, %s2782_s14, %s1404_s29  }
 0x6e8 PF: > { %s2931_s25 = sld [smem:[#allocation17_spill]]  ;;  %s2932_s19 = sld [smem:[#allocation21_spill]] }
 0x6e9   : > { %p1844_p8 = scmp.ge.s32.totalorder %s2273_s23, 2 }
 0x6ee   : > { %s1428_s28 = sand.u32 1, %s2931_s25   ;;  %p2933_p12 = scmp.ne.s32.totalorder %s2932_s19, 0 }
 0x6ef   : > { %s1429_s20 = scalar_lea.sflag [#allocation5], %s1428_s28 }
 0x6f0   : > { %p1832_p2 = pnand %p1844_p8, %p2933_p12 }
 0x6f2   : > { %2228 = dma.done.wait (!%p1832_p2), %s1429_s20, 16  }
 0x6f3   : > { %2230 = vsyncadd (!%p1832_p2), %s1429_s20, 4294967280  ;;  %s32_s23 = sadd.s32 1, %s2273_s23   ;;  %s2934_s12 = sld [smem:[#allocation22_spill]] }
 0x6f4   : > { %p29_p7 = scmp.ge.s32.totalorder %s32_s23, 6   ;;  %s2935_s29 = smov %s2237_s30 }
 0x6f5   : > { %s2936_s30 = smov %s2241_s15  ;;  %s2937_s15 = smov %s2577_s13 }
 0x6f6   : > { %s2938_s16 = smov %s2249_s17  ;;  %s2939_s17 = smov %s2253_s18 }
 0x6f7   : > { %s2940_s18 = smov %s2580_s0  ;;  %s2941_s19 = smov %s2265_s21 }
 0x6f8   : > { %s2942_s20 = smov %s2269_s22  ;;  %s2944_s22 = smov %s2950_s24 }
 0x6f9   : > { %s2943_s21 = smov %s2934_s12  ;;  %31 = sbr.rel (!%p29_p7) target bundleno = 27 (0x1b), region = 151 }
 0x700   :  { %1433 = vsyncpa [#allocation4], 1 }
 0x701   :  { %1435 = vsyncpa [#allocation4 + $0x1], 1 }
 0x702   :  { %1436 = vsyncpa [#allocation7], 1 }
 0x703   :  { %1437 = vsyncpa [#allocation10], 1 }
 0x704   :  { %1438 = vsyncpa [#allocation5], 1 }
 0x705   :  { %1440 = vsyncpa [#allocation5 + $0x1], 1 }

</bundles_post_ra>
